<compile_context>
chip_gen: v5e
topology: v5e:2x2
jax: 0.10.0
libtpu: 0.0.40
codegen_flags: <defaults>
</compile_context>

<pallas_src>
import functools

import numpy as np
import jax
import jax.numpy as jnp
from jax.experimental import pallas as pl
from jax.experimental.pallas import tpu as pltpu


# ----------------------------------------------------------------------------
# Frequency-regularization bookkeeping (tiny glue, host-side / plain JAX)
# ----------------------------------------------------------------------------
def z_index_2d(k: int) -> np.ndarray:
    """Equivalent of ZIdx2Int(getZIdx_2d(empty(k,k))): zig-zag-ish rank per tap."""
    idx = np.arange(k, dtype=np.float64)
    maxval1 = k + 1.0
    maxval2 = k + 1.0
    matdim1 = idx + idx / maxval1                 # row key
    matdim2 = idx + idx / (maxval1 * maxval2)     # col key
    matdim = matdim1[:, None] + matdim2[None, :]
    flat = matdim.reshape(-1)
    order = np.argsort(flat)
    ranks = np.empty_like(order)
    ranks[order] = np.arange(flat.size)
    return ranks.reshape(k, k)


def idct_matrix(k: int) -> np.ndarray:
    """Orthonormal inverse DCT-II (a.k.a. DCT-III) matrix: x = M @ X."""
    # TODO(synk): idct_2d is not defined in the provided source; we use the
    # standard orthonormal variant (torch_dct.idct_2d(..., norm='ortho')).
    n = np.arange(k)[:, None]      # spatial index
    f = np.arange(k)[None, :]      # frequency index
    m = np.cos(np.pi * (2.0 * n + 1.0) * f / (2.0 * k))
    scale = np.full((1, k), np.sqrt(2.0 / k))
    scale[0, 0] = np.sqrt(1.0 / k)
    return (m * scale).astype(np.float32)


# ----------------------------------------------------------------------------
# Fused conv kernel: per batch image, im2col + matmul + bias entirely on-chip
# ----------------------------------------------------------------------------
def _fused_conv_kernel(x_ref, w_ref, b_ref, o_ref, xf_ref, acc_ref,
                       *, k, stride, oh, ow):
    """Fused im2col @ filters + bias for one batch image.

    x_ref  : (1, HP, WP, C)     bf16  zero-padded NHWC input image
    w_ref  : (k*k, C, O_pad)    bf16  per-tap filter slices (resident)
    b_ref  : (1, O_pad)         f32   bias row (zero padded)
    o_ref  : (1, OH*OW, O_pad)  f32   output (lane-dense, 128-multiple lanes)
    xf_ref : (HP, WP, C)        f32   VMEM scratch (unpacked image)
    acc_ref: (OH*OW, O_pad)     f32   VMEM accumulator
    """
    m = oh * ow
    # Unpack the bf16 image once into an f32 VMEM scratch so the per-tap
    # (possibly unaligned) window slices below operate on an unpacked layout.
    xf_ref[...] = x_ref[0].astype(jnp.float32)
    acc_ref[...] = jnp.zeros_like(acc_ref)

    # k*k is small and static -> fully unrolled tap loop; each tap is one
    # (OH*OW, C) x (C, O_pad) MXU matmul accumulated in f32.
    for ki in range(k):
        for kj in range(k):
            if stride == 1:
                slab = xf_ref[ki:ki + oh, kj:kj + ow, :]
            else:
                # General-stride path (not exercised by the stride=1 test).
                slab = xf_ref[pl.ds(ki, oh, stride=stride),
                              pl.ds(kj, ow, stride=stride), :]
            a = slab.reshape(m, slab.shape[-1]).astype(w_ref.dtype)
            acc_ref[...] += jnp.dot(a, w_ref[ki * k + kj],
                                    preferred_element_type=jnp.float32)

    o_ref[0] = (acc_ref[...] + b_ref[...]).astype(o_ref.dtype)


def _fused_conv(x_nchw, w_spatial, bias, *, stride, padding,
                compute_dtype=jnp.bfloat16):
    """NCHW conv via the fused Pallas kernel. Returns NCHW f32."""
    n, c, h, w = x_nchw.shape
    o = w_spatial.shape[0]
    k = w_spatial.shape[-1]
    s, p = stride, padding
    oh = (h + 2 * p - k) // s + 1
    ow = (w + 2 * p - k) // s + 1
    hp, wp = h + 2 * p, w + 2 * p
    o_pad = ((o + 127) // 128) * 128          # lane-dense output channel dim

    # NHWC + spatial zero pad + narrow cast (single fused XLA pass over x; the
    # k^2-inflated im2col matrix is never materialized in HBM).
    xp = jnp.pad(x_nchw.transpose(0, 2, 3, 1).astype(compute_dtype),
                 ((0, 0), (p, p), (p, p), (0, 0)))
    # Per-tap filter slices: w_taps[ki*k+kj, c, o] = w_spatial[o, c, ki, kj].
    w_taps = w_spatial.transpose(2, 3, 1, 0).reshape(k * k, c, o)
    w_taps = jnp.pad(w_taps, ((0, 0), (0, 0), (0, o_pad - o))).astype(compute_dtype)
    bias_row = jnp.pad(bias.astype(jnp.float32), (0, o_pad - o)).reshape(1, o_pad)

    kernel = functools.partial(_fused_conv_kernel, k=k, stride=s, oh=oh, ow=ow)
    itemsize = np.dtype(compute_dtype).itemsize
    cost = pl.CostEstimate(
        flops=2 * n * oh * ow * c * k * k * o_pad,
        transcendentals=0,
        bytes_accessed=(n * hp * wp * c * itemsize
                        + k * k * c * o_pad * itemsize
                        + o_pad * 4
                        + n * oh * ow * o_pad * 4))

    out = pl.pallas_call(
        kernel,
        out_shape=jax.ShapeDtypeStruct((n, oh * ow, o_pad), jnp.float32),
        grid_spec=pltpu.PrefetchScalarGridSpec(
            num_scalar_prefetch=0,
            grid=(n,),                                      # one image per step
            in_specs=[
                pl.BlockSpec((1, hp, wp, c), lambda i: (i, 0, 0, 0)),
                pl.BlockSpec((k * k, c, o_pad), lambda i: (0, 0, 0)),
                pl.BlockSpec((1, o_pad), lambda i: (0, 0)),
            ],
            out_specs=pl.BlockSpec((1, oh * ow, o_pad), lambda i: (i, 0, 0)),
            scratch_shapes=[
                pltpu.VMEM((hp, wp, c), jnp.float32),       # unpacked image
                pltpu.VMEM((oh * ow, o_pad), jnp.float32),  # f32 accumulator
            ],
        ),
        compiler_params=pltpu.CompilerParams(
            dimension_semantics=("parallel",),              # megacore over batch
            vmem_limit_bytes=48 * 1024 * 1024,
        ),
        cost_estimate=cost,
    )(xp, w_taps, bias_row)

    # Slice channel padding off and restore NCHW (module interface).
    # NOTE: returning NHWC would save this final transpose pass; NCHW is kept
    # to preserve the PyTorch module's semantics.
    out = out[:, :, :o].reshape(n, oh, ow, o).transpose(0, 3, 1, 2)
    return out


# ----------------------------------------------------------------------------
# Conv2d_FR2d forward
# ----------------------------------------------------------------------------
class Conv2dFR2d:
    def __init__(self, in_channels, out_channels, kernel_size, stride=1,
                 padding=0, bias=True, minrate=0.1, droprate=0.001,
                 dropspeed=-1, dynamicdrop=False, compute_dtype=jnp.bfloat16,
                 key=None):
        k = kernel_size
        kw, kb = jax.random.split(key)
        self.weight = 0.1 * jax.random.normal(
            kw, (out_channels, in_channels, k, k), jnp.float32)
        self.bias = 0.1 * jax.random.normal(kb, (out_channels,), jnp.float32)
        self.stride = stride
        self.padding = padding
        self.ifbias = bias
        self.kernel_size = k
        self.compute_dtype = compute_dtype
        self.zmat = z_index_2d(k)
        self.idrop = np.ones((k, k), np.float32)
        self.minnum = max(round(k * k * minrate), 4)
        self.dynamicdrop = dynamicdrop
        self.dropcnt = float(k * k)
        self.dropspeed = dropspeed if dropspeed > 0 else droprate * k * k
        self.idct_m = jnp.asarray(idct_matrix(k))

    def current_filters(self):
        """Drop-masked weights transformed back to spatial domain via 2D IDCT."""
        idrop = jnp.asarray(self.idrop)
        dropweight = self.weight * idrop[None, None, :, :]
        # 2-D inverse DCT over (kh, kw): M @ W @ M^T
        return jnp.einsum('ip,ocpq,jq->ocij', self.idct_m, dropweight, self.idct_m)

    def __call__(self, x):
        # --- drop-mask bookkeeping (host-side scalar state, matches eager
        # PyTorch; note: not jit-safe — state is baked in at trace time) ---
        if self.dropcnt <= self.minnum:
            self.dropcnt = float(self.kernel_size * self.kernel_size)
            if self.dynamicdrop:
                self.idrop = np.ones_like(self.idrop)
        else:
            self.idrop = np.where(self.zmat < self.dropcnt,
                                  self.idrop, 0.0).astype(np.float32)
            self.dropcnt = self.dropcnt - self.dropspeed

        w_spatial = self.current_filters()
        bias = self.bias if self.ifbias else jnp.zeros_like(self.bias)
        return _fused_conv(x, w_spatial, bias, stride=self.stride,
                           padding=self.padding,
                           compute_dtype=self.compute_dtype)


def reference_forward(mod, x, compute_dtype=None):
    """Pure-JAX reference (lax conv) using the module's current state.

    With compute_dtype set, inputs/filters are cast the same way the Pallas
    kernel casts them (bf16 operands, f32 accumulation) for a tight check.
    """
    w_sp = mod.current_filters()
    if compute_dtype is not None:
        x = x.astype(compute_dtype)
        w_sp = w_sp.astype(compute_dtype)
    y = jax.lax.conv_general_dilated(
        x, w_sp, (mod.stride, mod.stride),
        [(mod.padding, mod.padding), (mod.padding, mod.padding)],
        dimension_numbers=('NCHW', 'OIHW', 'NCHW'),
        preferred_element_type=jnp.float32)
    if mod.ifbias:
        y = y + mod.bias[None, :, None, None]
    return y


if __name__ == "__main__":
    key = jax.random.PRNGKey(0)
    kx, kp = jax.random.split(key)

    N, C_IN, C_OUT, H, W, K = 2, 4, 8, 16, 16, 3
    x = jax.random.normal(kx, (N, C_IN, H, W), jnp.float32)

    mod = Conv2dFR2d(C_IN, C_OUT, K, stride=1, padding=1, bias=True, key=kp)

    out = jax.block_until_ready(mod(x))
    assert out.shape == (N, C_OUT, H, W), out.shape

    # Tight check against a matched-precision reference (bf16 operands, f32 acc).
    ref_bf16 = jax.block_until_ready(
        reference_forward(mod, x, compute_dtype=jnp.bfloat16))
    err = float(np.max(np.abs(np.asarray(out) - np.asarray(ref_bf16))))
    assert np.allclose(np.asarray(out), np.asarray(ref_bf16),
                       rtol=1e-4, atol=1e-3), err

    # Sanity check against the full-f32 reference (bf16 quantization tolerance).
    ref_f32 = jax.block_until_ready(reference_forward(mod, x))
    err32 = float(np.max(np.abs(np.asarray(out) - np.asarray(ref_f32))))
    assert np.allclose(np.asarray(out), np.asarray(ref_f32),
                       rtol=5e-2, atol=5e-2), err32

    print("KERNEL_OK")
</pallas_src>

<mosaic_0001>
module attributes {stable_mosaic.version = 11 : i64} {
  func.func @_fused_conv_kernel(%arg0: i32, %arg1: memref<1x18x18x4xbf16, #tpu.memory_space<vmem>>, %arg2: memref<9x4x128xbf16, #tpu.memory_space<vmem>>, %arg3: memref<1x128xf32, #tpu.memory_space<vmem>>, %arg4: memref<1x256x128xf32, #tpu.memory_space<vmem>>, %arg5: memref<18x18x4xf32, #tpu.memory_space<vmem>>, %arg6: memref<256x128xf32, #tpu.memory_space<vmem>>) attributes {dimension_semantics = [#tpu.dimension_semantics<parallel>], iteration_bounds = array<i64: 2>, scalar_prefetch = 0 : i64, scratch_operands = 2 : i64, tpu.core_type = #tpu.core_type<tc>, window_params = [{transform_indices = @transform_0, window_bounds = array<i64: 1, 18, 18, 4>}, {pipeline_mode = #tpu.pipeline_mode<synchronous>, transform_indices = @transform_1, window_bounds = array<i64: 9, 4, 128>}, {pipeline_mode = #tpu.pipeline_mode<synchronous>, transform_indices = @transform_2, window_bounds = array<i64: 1, 128>}, {transform_indices = @transform_3, window_bounds = array<i64: 1, 256, 128>}]} {
    %c0 = arith.constant 0 : index
    %c0_0 = arith.constant 0 : index
    %c0_1 = arith.constant 0 : index
    %c0_2 = arith.constant 0 : index
    %0 = vector.load %arg1[%c0, %c0_0, %c0_1, %c0_2] : memref<1x18x18x4xbf16, #tpu.memory_space<vmem>>, vector<1x18x18x4xbf16>
    %1 = vector.shape_cast %0 : vector<1x18x18x4xbf16> to vector<18x18x4xbf16>
    %2 = arith.extf %1 : vector<18x18x4xbf16> to vector<18x18x4xf32>
    %c0_3 = arith.constant 0 : index
    %c0_4 = arith.constant 0 : index
    %c0_5 = arith.constant 0 : index
    %3 = vector.load %arg5[%c0_3, %c0_4, %c0_5] : memref<18x18x4xf32, #tpu.memory_space<vmem>>, vector<18x18x4xf32>
    tpu.vector_store %arg5[%c0_3, %c0_4, %c0_5], %2 {strides = array<i32>} : memref<18x18x4xf32, #tpu.memory_space<vmem>>, vector<18x18x4xf32>,
    %cst = arith.constant 0.000000e+00 : f32
    %4 = vector.broadcast %cst : f32 to vector<256x128xf32>
    %c0_6 = arith.constant 0 : index
    %c0_7 = arith.constant 0 : index
    %5 = vector.load %arg6[%c0_6, %c0_7] : memref<256x128xf32, #tpu.memory_space<vmem>>, vector<256x128xf32>
    tpu.vector_store %arg6[%c0_6, %c0_7], %4 {strides = array<i32>} : memref<256x128xf32, #tpu.memory_space<vmem>>, vector<256x128xf32>,
    %c0_8 = arith.constant 0 : index
    %c0_9 = arith.constant 0 : index
    %c0_10 = arith.constant 0 : index
    %6 = vector.load %arg5[%c0_8, %c0_9, %c0_10] : memref<18x18x4xf32, #tpu.memory_space<vmem>>, vector<16x16x4xf32>
    %7 = vector.shape_cast %6 : vector<16x16x4xf32> to vector<256x4xf32>
    %8 = arith.truncf %7 : vector<256x4xf32> to vector<256x4xbf16>
    %c0_11 = arith.constant 0 : index
    %c0_12 = arith.constant 0 : index
    %9 = vector.load %arg6[%c0_11, %c0_12] : memref<256x128xf32, #tpu.memory_space<vmem>>, vector<256x128xf32>
    %c0_13 = arith.constant 0 : index
    %c0_14 = arith.constant 0 : index
    %c0_15 = arith.constant 0 : index
    %10 = vector.load %arg2[%c0_13, %c0_14, %c0_15] : memref<9x4x128xbf16, #tpu.memory_space<vmem>>, vector<1x4x128xbf16>
    %11 = vector.shape_cast %10 : vector<1x4x128xbf16> to vector<4x128xbf16>
    %cst_16 = arith.constant dense<0.000000e+00> : vector<256x128xf32>
    %12 = tpu.matmul %8, %11, %cst_16 {dimension_numbers = #tpu.dot_dimension_numbers<[1], [0], [0], [1], [0, 0, 1, 1], [], []>} : vector<256x4xbf16>, vector<4x128xbf16>, vector<256x128xf32> -> vector<256x128xf32>
    %13 = arith.addf %9, %12 : vector<256x128xf32>
    %c0_17 = arith.constant 0 : index
    %c0_18 = arith.constant 0 : index
    %14 = vector.load %arg6[%c0_17, %c0_18] : memref<256x128xf32, #tpu.memory_space<vmem>>, vector<256x128xf32>
    tpu.vector_store %arg6[%c0_17, %c0_18], %13 {strides = array<i32>} : memref<256x128xf32, #tpu.memory_space<vmem>>, vector<256x128xf32>,
    %c0_19 = arith.constant 0 : index
    %c1 = arith.constant 1 : index
    %c0_20 = arith.constant 0 : index
    %15 = vector.load %arg5[%c0_19, %c1, %c0_20] : memref<18x18x4xf32, #tpu.memory_space<vmem>>, vector<16x16x4xf32>
    %16 = vector.shape_cast %15 : vector<16x16x4xf32> to vector<256x4xf32>
    %17 = arith.truncf %16 : vector<256x4xf32> to vector<256x4xbf16>
    %c0_21 = arith.constant 0 : index
    %c0_22 = arith.constant 0 : index
    %18 = vector.load %arg6[%c0_21, %c0_22] : memref<256x128xf32, #tpu.memory_space<vmem>>, vector<256x128xf32>
    %c1_23 = arith.constant 1 : index
    %c0_24 = arith.constant 0 : index
    %c0_25 = arith.constant 0 : index
    %19 = vector.load %arg2[%c1_23, %c0_24, %c0_25] : memref<9x4x128xbf16, #tpu.memory_space<vmem>>, vector<1x4x128xbf16>
    %20 = vector.shape_cast %19 : vector<1x4x128xbf16> to vector<4x128xbf16>
    %cst_26 = arith.constant dense<0.000000e+00> : vector<256x128xf32>
    %21 = tpu.matmul %17, %20, %cst_26 {dimension_numbers = #tpu.dot_dimension_numbers<[1], [0], [0], [1], [0, 0, 1, 1], [], []>} : vector<256x4xbf16>, vector<4x128xbf16>, vector<256x128xf32> -> vector<256x128xf32>
    %22 = arith.addf %18, %21 : vector<256x128xf32>
    %c0_27 = arith.constant 0 : index
    %c0_28 = arith.constant 0 : index
    %23 = vector.load %arg6[%c0_27, %c0_28] : memref<256x128xf32, #tpu.memory_space<vmem>>, vector<256x128xf32>
    tpu.vector_store %arg6[%c0_27, %c0_28], %22 {strides = array<i32>} : memref<256x128xf32, #tpu.memory_space<vmem>>, vector<256x128xf32>,
    %c0_29 = arith.constant 0 : index
    %c2 = arith.constant 2 : index
    %c0_30 = arith.constant 0 : index
    %24 = vector.load %arg5[%c0_29, %c2, %c0_30] : memref<18x18x4xf32, #tpu.memory_space<vmem>>, vector<16x16x4xf32>
    %25 = vector.shape_cast %24 : vector<16x16x4xf32> to vector<256x4xf32>
    %26 = arith.truncf %25 : vector<256x4xf32> to vector<256x4xbf16>
    %c0_31 = arith.constant 0 : index
    %c0_32 = arith.constant 0 : index
    %27 = vector.load %arg6[%c0_31, %c0_32] : memref<256x128xf32, #tpu.memory_space<vmem>>, vector<256x128xf32>
    %c2_33 = arith.constant 2 : index
    %c0_34 = arith.constant 0 : index
    %c0_35 = arith.constant 0 : index
    %28 = vector.load %arg2[%c2_33, %c0_34, %c0_35] : memref<9x4x128xbf16, #tpu.memory_space<vmem>>, vector<1x4x128xbf16>
    %29 = vector.shape_cast %28 : vector<1x4x128xbf16> to vector<4x128xbf16>
    %cst_36 = arith.constant dense<0.000000e+00> : vector<256x128xf32>
    %30 = tpu.matmul %26, %29, %cst_36 {dimension_numbers = #tpu.dot_dimension_numbers<[1], [0], [0], [1], [0, 0, 1, 1], [], []>} : vector<256x4xbf16>, vector<4x128xbf16>, vector<256x128xf32> -> vector<256x128xf32>
    %31 = arith.addf %27, %30 : vector<256x128xf32>
    %c0_37 = arith.constant 0 : index
    %c0_38 = arith.constant 0 : index
    %32 = vector.load %arg6[%c0_37, %c0_38] : memref<256x128xf32, #tpu.memory_space<vmem>>, vector<256x128xf32>
    tpu.vector_store %arg6[%c0_37, %c0_38], %31 {strides = array<i32>} : memref<256x128xf32, #tpu.memory_space<vmem>>, vector<256x128xf32>,
    %c1_39 = arith.constant 1 : index
    %c0_40 = arith.constant 0 : index
    %c0_41 = arith.constant 0 : index
    %33 = vector.load %arg5[%c1_39, %c0_40, %c0_41] : memref<18x18x4xf32, #tpu.memory_space<vmem>>, vector<16x16x4xf32>
    %34 = vector.shape_cast %33 : vector<16x16x4xf32> to vector<256x4xf32>
    %35 = arith.truncf %34 : vector<256x4xf32> to vector<256x4xbf16>
    %c0_42 = arith.constant 0 : index
    %c0_43 = arith.constant 0 : index
    %36 = vector.load %arg6[%c0_42, %c0_43] : memref<256x128xf32, #tpu.memory_space<vmem>>, vector<256x128xf32>
    %c3 = arith.constant 3 : index
    %c0_44 = arith.constant 0 : index
    %c0_45 = arith.constant 0 : index
    %37 = vector.load %arg2[%c3, %c0_44, %c0_45] : memref<9x4x128xbf16, #tpu.memory_space<vmem>>, vector<1x4x128xbf16>
    %38 = vector.shape_cast %37 : vector<1x4x128xbf16> to vector<4x128xbf16>
    %cst_46 = arith.constant dense<0.000000e+00> : vector<256x128xf32>
    %39 = tpu.matmul %35, %38, %cst_46 {dimension_numbers = #tpu.dot_dimension_numbers<[1], [0], [0], [1], [0, 0, 1, 1], [], []>} : vector<256x4xbf16>, vector<4x128xbf16>, vector<256x128xf32> -> vector<256x128xf32>
    %40 = arith.addf %36, %39 : vector<256x128xf32>
    %c0_47 = arith.constant 0 : index
    %c0_48 = arith.constant 0 : index
    %41 = vector.load %arg6[%c0_47, %c0_48] : memref<256x128xf32, #tpu.memory_space<vmem>>, vector<256x128xf32>
    tpu.vector_store %arg6[%c0_47, %c0_48], %40 {strides = array<i32>} : memref<256x128xf32, #tpu.memory_space<vmem>>, vector<256x128xf32>,
    %c1_49 = arith.constant 1 : index
    %c1_50 = arith.constant 1 : index
    %c0_51 = arith.constant 0 : index
    %42 = vector.load %arg5[%c1_49, %c1_50, %c0_51] : memref<18x18x4xf32, #tpu.memory_space<vmem>>, vector<16x16x4xf32>
    %43 = vector.shape_cast %42 : vector<16x16x4xf32> to vector<256x4xf32>
    %44 = arith.truncf %43 : vector<256x4xf32> to vector<256x4xbf16>
    %c0_52 = arith.constant 0 : index
    %c0_53 = arith.constant 0 : index
    %45 = vector.load %arg6[%c0_52, %c0_53] : memref<256x128xf32, #tpu.memory_space<vmem>>, vector<256x128xf32>
    %c4 = arith.constant 4 : index
    %c0_54 = arith.constant 0 : index
    %c0_55 = arith.constant 0 : index
    %46 = vector.load %arg2[%c4, %c0_54, %c0_55] : memref<9x4x128xbf16, #tpu.memory_space<vmem>>, vector<1x4x128xbf16>
    %47 = vector.shape_cast %46 : vector<1x4x128xbf16> to vector<4x128xbf16>
    %cst_56 = arith.constant dense<0.000000e+00> : vector<256x128xf32>
    %48 = tpu.matmul %44, %47, %cst_56 {dimension_numbers = #tpu.dot_dimension_numbers<[1], [0], [0], [1], [0, 0, 1, 1], [], []>} : vector<256x4xbf16>, vector<4x128xbf16>, vector<256x128xf32> -> vector<256x128xf32>
    %49 = arith.addf %45, %48 : vector<256x128xf32>
    %c0_57 = arith.constant 0 : index
    %c0_58 = arith.constant 0 : index
    %50 = vector.load %arg6[%c0_57, %c0_58] : memref<256x128xf32, #tpu.memory_space<vmem>>, vector<256x128xf32>
    tpu.vector_store %arg6[%c0_57, %c0_58], %49 {strides = array<i32>} : memref<256x128xf32, #tpu.memory_space<vmem>>, vector<256x128xf32>,
    %c1_59 = arith.constant 1 : index
    %c2_60 = arith.constant 2 : index
    %c0_61 = arith.constant 0 : index
    %51 = vector.load %arg5[%c1_59, %c2_60, %c0_61] : memref<18x18x4xf32, #tpu.memory_space<vmem>>, vector<16x16x4xf32>
    %52 = vector.shape_cast %51 : vector<16x16x4xf32> to vector<256x4xf32>
    %53 = arith.truncf %52 : vector<256x4xf32> to vector<256x4xbf16>
    %c0_62 = arith.constant 0 : index
    %c0_63 = arith.constant 0 : index
    %54 = vector.load %arg6[%c0_62, %c0_63] : memref<256x128xf32, #tpu.memory_space<vmem>>, vector<256x128xf32>
    %c5 = arith.constant 5 : index
    %c0_64 = arith.constant 0 : index
    %c0_65 = arith.constant 0 : index
    %55 = vector.load %arg2[%c5, %c0_64, %c0_65] : memref<9x4x128xbf16, #tpu.memory_space<vmem>>, vector<1x4x128xbf16>
    %56 = vector.shape_cast %55 : vector<1x4x128xbf16> to vector<4x128xbf16>
    %cst_66 = arith.constant dense<0.000000e+00> : vector<256x128xf32>
    %57 = tpu.matmul %53, %56, %cst_66 {dimension_numbers = #tpu.dot_dimension_numbers<[1], [0], [0], [1], [0, 0, 1, 1], [], []>} : vector<256x4xbf16>, vector<4x128xbf16>, vector<256x128xf32> -> vector<256x128xf32>
    %58 = arith.addf %54, %57 : vector<256x128xf32>
    %c0_67 = arith.constant 0 : index
    %c0_68 = arith.constant 0 : index
    %59 = vector.load %arg6[%c0_67, %c0_68] : memref<256x128xf32, #tpu.memory_space<vmem>>, vector<256x128xf32>
    tpu.vector_store %arg6[%c0_67, %c0_68], %58 {strides = array<i32>} : memref<256x128xf32, #tpu.memory_space<vmem>>, vector<256x128xf32>,
    %c2_69 = arith.constant 2 : index
    %c0_70 = arith.constant 0 : index
    %c0_71 = arith.constant 0 : index
    %60 = vector.load %arg5[%c2_69, %c0_70, %c0_71] : memref<18x18x4xf32, #tpu.memory_space<vmem>>, vector<16x16x4xf32>
    %61 = vector.shape_cast %60 : vector<16x16x4xf32> to vector<256x4xf32>
    %62 = arith.truncf %61 : vector<256x4xf32> to vector<256x4xbf16>
    %c0_72 = arith.constant 0 : index
    %c0_73 = arith.constant 0 : index
    %63 = vector.load %arg6[%c0_72, %c0_73] : memref<256x128xf32, #tpu.memory_space<vmem>>, vector<256x128xf32>
    %c6 = arith.constant 6 : index
    %c0_74 = arith.constant 0 : index
    %c0_75 = arith.constant 0 : index
    %64 = vector.load %arg2[%c6, %c0_74, %c0_75] : memref<9x4x128xbf16, #tpu.memory_space<vmem>>, vector<1x4x128xbf16>
    %65 = vector.shape_cast %64 : vector<1x4x128xbf16> to vector<4x128xbf16>
    %cst_76 = arith.constant dense<0.000000e+00> : vector<256x128xf32>
    %66 = tpu.matmul %62, %65, %cst_76 {dimension_numbers = #tpu.dot_dimension_numbers<[1], [0], [0], [1], [0, 0, 1, 1], [], []>} : vector<256x4xbf16>, vector<4x128xbf16>, vector<256x128xf32> -> vector<256x128xf32>
    %67 = arith.addf %63, %66 : vector<256x128xf32>
    %c0_77 = arith.constant 0 : index
    %c0_78 = arith.constant 0 : index
    %68 = vector.load %arg6[%c0_77, %c0_78] : memref<256x128xf32, #tpu.memory_space<vmem>>, vector<256x128xf32>
    tpu.vector_store %arg6[%c0_77, %c0_78], %67 {strides = array<i32>} : memref<256x128xf32, #tpu.memory_space<vmem>>, vector<256x128xf32>,
    %c2_79 = arith.constant 2 : index
    %c1_80 = arith.constant 1 : index
    %c0_81 = arith.constant 0 : index
    %69 = vector.load %arg5[%c2_79, %c1_80, %c0_81] : memref<18x18x4xf32, #tpu.memory_space<vmem>>, vector<16x16x4xf32>
    %70 = vector.shape_cast %69 : vector<16x16x4xf32> to vector<256x4xf32>
    %71 = arith.truncf %70 : vector<256x4xf32> to vector<256x4xbf16>
    %c0_82 = arith.constant 0 : index
    %c0_83 = arith.constant 0 : index
    %72 = vector.load %arg6[%c0_82, %c0_83] : memref<256x128xf32, #tpu.memory_space<vmem>>, vector<256x128xf32>
    %c7 = arith.constant 7 : index
    %c0_84 = arith.constant 0 : index
    %c0_85 = arith.constant 0 : index
    %73 = vector.load %arg2[%c7, %c0_84, %c0_85] : memref<9x4x128xbf16, #tpu.memory_space<vmem>>, vector<1x4x128xbf16>
    %74 = vector.shape_cast %73 : vector<1x4x128xbf16> to vector<4x128xbf16>
    %cst_86 = arith.constant dense<0.000000e+00> : vector<256x128xf32>
    %75 = tpu.matmul %71, %74, %cst_86 {dimension_numbers = #tpu.dot_dimension_numbers<[1], [0], [0], [1], [0, 0, 1, 1], [], []>} : vector<256x4xbf16>, vector<4x128xbf16>, vector<256x128xf32> -> vector<256x128xf32>
    %76 = arith.addf %72, %75 : vector<256x128xf32>
    %c0_87 = arith.constant 0 : index
    %c0_88 = arith.constant 0 : index
    %77 = vector.load %arg6[%c0_87, %c0_88] : memref<256x128xf32, #tpu.memory_space<vmem>>, vector<256x128xf32>
    tpu.vector_store %arg6[%c0_87, %c0_88], %76 {strides = array<i32>} : memref<256x128xf32, #tpu.memory_space<vmem>>, vector<256x128xf32>,
    %c2_89 = arith.constant 2 : index
    %c2_90 = arith.constant 2 : index
    %c0_91 = arith.constant 0 : index
    %78 = vector.load %arg5[%c2_89, %c2_90, %c0_91] : memref<18x18x4xf32, #tpu.memory_space<vmem>>, vector<16x16x4xf32>
    %79 = vector.shape_cast %78 : vector<16x16x4xf32> to vector<256x4xf32>
    %80 = arith.truncf %79 : vector<256x4xf32> to vector<256x4xbf16>
    %c0_92 = arith.constant 0 : index
    %c0_93 = arith.constant 0 : index
    %81 = vector.load %arg6[%c0_92, %c0_93] : memref<256x128xf32, #tpu.memory_space<vmem>>, vector<256x128xf32>
    %c8 = arith.constant 8 : index
    %c0_94 = arith.constant 0 : index
    %c0_95 = arith.constant 0 : index
    %82 = vector.load %arg2[%c8, %c0_94, %c0_95] : memref<9x4x128xbf16, #tpu.memory_space<vmem>>, vector<1x4x128xbf16>
    %83 = vector.shape_cast %82 : vector<1x4x128xbf16> to vector<4x128xbf16>
    %cst_96 = arith.constant dense<0.000000e+00> : vector<256x128xf32>
    %84 = tpu.matmul %80, %83, %cst_96 {dimension_numbers = #tpu.dot_dimension_numbers<[1], [0], [0], [1], [0, 0, 1, 1], [], []>} : vector<256x4xbf16>, vector<4x128xbf16>, vector<256x128xf32> -> vector<256x128xf32>
    %85 = arith.addf %81, %84 : vector<256x128xf32>
    %c0_97 = arith.constant 0 : index
    %c0_98 = arith.constant 0 : index
    %86 = vector.load %arg6[%c0_97, %c0_98] : memref<256x128xf32, #tpu.memory_space<vmem>>, vector<256x128xf32>
    tpu.vector_store %arg6[%c0_97, %c0_98], %85 {strides = array<i32>} : memref<256x128xf32, #tpu.memory_space<vmem>>, vector<256x128xf32>,
    %c0_99 = arith.constant 0 : index
    %c0_100 = arith.constant 0 : index
    %87 = vector.load %arg6[%c0_99, %c0_100] : memref<256x128xf32, #tpu.memory_space<vmem>>, vector<256x128xf32>
    %c0_101 = arith.constant 0 : index
    %c0_102 = arith.constant 0 : index
    %88 = vector.load %arg3[%c0_101, %c0_102] : memref<1x128xf32, #tpu.memory_space<vmem>>, vector<1x128xf32>
    %89 = vector.broadcast %88 : vector<1x128xf32> to vector<256x128xf32>
    %90 = arith.addf %87, %89 : vector<256x128xf32>
    %c0_103 = arith.constant 0 : index
    %c0_104 = arith.constant 0 : index
    %c0_105 = arith.constant 0 : index
    %91 = vector.load %arg4[%c0_103, %c0_104, %c0_105] : memref<1x256x128xf32, #tpu.memory_space<vmem>>, vector<1x256x128xf32>
    %92 = vector.shape_cast %91 : vector<1x256x128xf32> to vector<256x128xf32>
    %93 = vector.shape_cast %90 : vector<256x128xf32> to vector<1x256x128xf32>
    tpu.vector_store %arg4[%c0_103, %c0_104, %c0_105], %93 {strides = array<i32>} : memref<1x256x128xf32, #tpu.memory_space<vmem>>, vector<1x256x128xf32>,
    return
  }
  func.func @transform_0(%arg0: i32) -> (i32, i32, i32, i32) {
    %c0_i32 = arith.constant 0 : i32
    %c0_i32_0 = arith.constant 0 : i32
    %c0_i32_1 = arith.constant 0 : i32
    %c0_i32_2 = arith.constant 0 : i32
    return %arg0, %c0_i32, %c0_i32_0, %c0_i32_1 : i32, i32, i32, i32
  }
  func.func @transform_1(%arg0: i32) -> (i32, i32, i32) {
    %c0_i32 = arith.constant 0 : i32
    %c0_i32_0 = arith.constant 0 : i32
    %c0_i32_1 = arith.constant 0 : i32
    %c0_i32_2 = arith.constant 0 : i32
    return %c0_i32, %c0_i32_0, %c0_i32_1 : i32, i32, i32
  }
  func.func @transform_2(%arg0: i32) -> (i32, i32) {
    %c0_i32 = arith.constant 0 : i32
    %c0_i32_0 = arith.constant 0 : i32
    %c0_i32_1 = arith.constant 0 : i32
    return %c0_i32, %c0_i32_0 : i32, i32
  }
  func.func @transform_3(%arg0: i32) -> (i32, i32, i32) {
    %c0_i32 = arith.constant 0 : i32
    %c0_i32_0 = arith.constant 0 : i32
    %c0_i32_1 = arith.constant 0 : i32
    return %arg0, %c0_i32, %c0_i32_0 : i32, i32, i32
  }
}

</mosaic_0001>

<bundles_post_ra>
// kernel: tpu_custom_call.1
= control target key start
LH: loop header
LB: loop body
LE: loop exit
PB: predicated region body
PF: predicated region fallthrough
CT: control target
= control target key end

     0   :  { %8 = vsyncpa [#allocation5], 0  ;;  %s4294_s0 = inlined_call_operand.vmem [shape: bf16[2,18,18,4], index: 0, kind: input, shape index: {}]   ;;  %s4295_s1 = inlined_call_operand.vmem [shape: bf16[9,4,128], index: 1, kind: input, shape index: {}]   ;;  %s4296_s2 = inlined_call_operand.vmem [shape: f32[1,128], index: 2, kind: input, shape index: {}]   ;;  %s4297_s3 = inlined_call_operand.hbm [shape: f32[2,256,128], index: 3, kind: output, shape index: {}]  }
   0x1   :  { %10 = vsyncpa [#allocation5 + $0x1], 0  ;;  %s3460_s12 = smov 0   ;;  %s3462_s13 = smov 0  }
   0x2   :  { %s3464_s14 = smov 0   ;;  %s3466_s15 = smov 0  }
   0x3 LB: > { %s3481_s16 = sadd.s32 4294967295, %s3436_s15   ;;  %s3120_s17 = sadd.s32 4294967294, %s3436_s15   ;;  %s3436_s15 = sphi %s3466_s15, %s4343_s15   ;;  %s3432_s14 = sphi %s3464_s14, %s4342_s14   ;;  %s3428_s13 = sphi %s3462_s13, %s4341_s13   ;;  %s3424_s12 = sphi %s3460_s12, %s4340_s12  }
   0x4   : > { %s3485_s18 = sadd.s32 1, %s3436_s15   ;;  %s91_s19 = sadd.s32 1, %s3432_s14 }
   0x5   : > { %s88_s20 = ssub.s32 %s3436_s15, %s3485_s18  ;;  %p101_p0 = scmp.ne.s32.totalorder %s3432_s14, %s3428_s13 }
   0x6   : > { %p89_p1 = scmp.eq.s32.totalorder %s88_s20, 0  ;;  %p102_p2 = scmp.eq.s32.totalorder %s3481_s16, 1 }
   0x7   : > { %p107_p3 = scmp.ne.s32.totalorder %s3428_s13, %s3424_s12  ;;  %p108_p4 = scmp.eq.s32.totalorder %s3120_s17, 1 }
   0x8   : > { %s3496_s21 = scalar_select %p89_p1, %s3432_s14, %s91_s19  }
   0x9   : > { %p3498_p5 = por %p102_p2, %p101_p0  ;;  %p3502_p6 = por %p108_p4, %p107_p3 }
   0xa   : > { %p3123_p7 = scmp.ge.s32.totalorder %s3436_s15, 1  ;;  %p140_p8 = scmp.lt.s32.totalorder %s3436_s15, 3 }
   0xc   : > { %p141_p9 = pnand %p3123_p7, %p140_p8 }
   0xe   : > { %144 = sbr.rel (%p141_p9) target bundleno = 754 (0x2f2), region = 32 }
  0x13   : > { %v446_v0 = vld [vmem:[%s4295_s1] sm:$0x3]  ;;  %vm495_vm0 = vcmask 1041408   ;;  %p164_p10 = scmp.lt.s32.totalorder %s3481_s16, 1  ;;  %v3159_v2 = vld [vmem:[%s4295_s1 + $0x4] sm:$0x3] }
  0x14   : > { %v497_v1 = vsel %vm495_vm0, %v446_v0, 0  ;;  %v3176_v3 = vld [vmem:[%s4295_s1 + $0x6] sm:$0x3]  ;;  %v1069_v4 = vsel %vm495_vm0, %v3159_v2, 0  ;;  %v3142_v6 = vld [vmem:[%s4295_s1 + $0x2] sm:$0x3] }
  0x15   : > { %3328 = vmatpush.bf16.msra.mxu1 %v497_v1  ;;  %3329 = vmatpush.bf16.msra.mxu2 %v497_v1  ;;  %s165_s30 = scalar_select %p164_p10, %s3481_s16, 1  ;;  %v1356_v5 = vsel %vm495_vm0, %v3176_v3, 0  ;;  %v783_v7 = vsel %vm495_vm0, %v3142_v6, 0  ;;  %v3193_v8 = vld [vmem:[%s4295_s1 + $0x8] sm:$0x3]  ;;  %vm278_vm1 = vcmask 31744  }
  0x16   : > { %3330 = vmatpush.bf16.msra.mxu3 %v497_v1  ;;  %506 = vmatpush.bf16.msra.mxu0 %v497_v1  ;;  %v1642_v9 = vsel %vm495_vm0, %v3193_v8, 0  ;;  %vm281_vm2 = vcmask 25600   ;;  %s161_s29 = sand.u32 1, %s3428_s13   ;;  %s3283_s7 = sshll.u32 %s3481_s16, 8 }
  0x17   : > { %s3331_s8 = smul.u32 216, %s165_s30  ;;  %s3124_s30 = sshll.u32 %s161_s29, 8 }
  0x18   : > { %s4114_s6 = scalar_lea.vmem [#allocation4], %s3124_s30  ;;  %s3054_s10 = scalar_lea.hbm %s4297_s3, %s3283_s7 }
  0x19   : > { %1078 = vmatpush.bf16.msrb.mxu2 %v1069_v4  ;;  %792 = vmatpush.bf16.msrb.mxu1 %v783_v7  ;;  %s3533_s11 = scalar_lea.vmem %s4294_s0, %s3331_s8  ;;  %s3057_s17 = sshll.u32 %s3054_s10, 4  ;;  %s3058_s17 = int_to_ptr.hbm [resolvable:$true] %s3057_s17 }
  0x1a   : > { %1365 = vmatpush.bf16.msrb.mxu3 %v1356_v5  ;;  %1651 = vmatpush.bf16.msrb.mxu0 %v1642_v9  ;;  %v3321_v10 = vld [vmem:[%s3533_s11 + $0x30] sm:$0xff]   ;;  %v3323_v11 = vld [vmem:[%s3533_s11 + $0x60] sm:$0xff]   ;;  %v3322_v36 = vld [vmem:[%s3533_s11 + $0x48] sm:$0xff]   ;;  %s3043_s16 = scalar_lea.sflag [#allocation5], %s161_s29  ;;  %s3388_s19 = sshra.s32 %s3058_s17, 4  ;;  %s3389_s19 = int_to_ptr.hbm [resolvable:$true] %s3388_s19 }
  0x1b   : > { %v3325_v12 = vld [vmem:[%s3533_s11 + $0x90] sm:$0xff]   ;;  %v3294_v13 = vunpack.c.l.bf16 %v3321_v10  ;;  %v3295_v14 = vunpack.c.h.bf16 %v3321_v10  ;;  %v3302_v15 = vunpack.c.l.bf16 %v3323_v11  ;;  %v3303_v16 = vunpack.c.h.bf16 %v3323_v11  ;;  %v3285_v17 = vld [vmem:[%s3533_s11] sm:$0xff]   ;;  %v3324_v42 = vld [vmem:[%s3533_s11 + $0x78] sm:$0xff]   ;;  %s3390_s20 = scalar_lea.hbm %s3389_s19, 256  ;;  %s3394_s26 = scalar_lea.hbm %s4297_s3, 512 }
  0x1c   : > { %v3310_v18 = vunpack.c.l.bf16 %v3325_v12  ;;  %v3311_v19 = vunpack.c.h.bf16 %v3325_v12  ;;  %v185_v20 = vld [vmem:[%s3533_s11 + $0x3c] sm:$0xff]   ;;  %v3286_v21 = vunpack.c.l.bf16 %v3285_v17  ;;  %v3287_v22 = vunpack.c.h.bf16 %v3285_v17  ;;  %v197_v23 = vld [vmem:[%s3533_s11 + $0x6c] sm:$0xff]   ;;  %v191_v56 = vld [vmem:[%s3533_s11 + $0x54] sm:$0xff]   ;;  %p3391_p11 = scmp.ne.s32.totalorder %s3389_s19, %s3390_s20  ;;  %p3395_p0 = scmp.lt.s32.totalorder %s3389_s19, %s4297_s3 }
  0x1d   : > { %292 = vst.msk [vmem:[#allocation2 + $0x60] sm:$0xff] %vm278_vm1, %v3294_v13  ;;  %v239_v24 = vunpack.c.l.bf16 %v185_v20  ;;  %v240_v25 = vunpack.c.h.bf16 %v185_v20  ;;  %v209_v26 = vld [vmem:[%s3533_s11 + $0x9c] sm:$0xff]   ;;  %v251_v27 = vunpack.c.l.bf16 %v197_v23  ;;  %v252_v29 = vunpack.c.h.bf16 %v197_v23  ;;  %v173_v30 = vld [vmem:[%s3533_s11 + $0xc] sm:$0xff]   ;;  %v203_v59 = vld [vmem:[%s3533_s11 + $0x84] sm:$0xff]   ;;  %p3396_p1 = scmp.lt.s32.totalorder %s3394_s26, %s3390_s20 }
  0x1e   : > { %293 = vst.msk [vmem:[#allocation2 + $0x68] sm:$0xff] %vm278_vm1, %v3295_v14  ;;  %v263_v32 = vunpack.c.l.bf16 %v209_v26  ;;  %v264_v35 = vunpack.c.h.bf16 %v209_v26  ;;  %v227_v38 = vunpack.c.l.bf16 %v173_v30  ;;  %v228_v41 = vunpack.c.h.bf16 %v173_v30  ;;  %v3326_v48 = vld [vmem:[%s3533_s11 + $0xa8] sm:$0xff]   ;;  %v3320_v53 = vld [vmem:[%s3533_s11 + $0x18] sm:$0xff]   ;;  %p3392_p12 = pnand %p3391_p11, %p3498_p5 }
  0x1f   : > { %304 = vst.msk [vmem:[#allocation2 + $0xc0] sm:$0xff] %vm278_vm1, %v3302_v15  ;;  %v3298_v44 = vunpack.c.l.bf16 %v3322_v36  ;;  %v3299_v47 = vunpack.c.h.bf16 %v3322_v36  ;;  %v3306_v50 = vunpack.c.l.bf16 %v3324_v42  ;;  %v3307_v52 = vunpack.c.h.bf16 %v3324_v42  ;;  %v215_v0 = vld [vmem:[%s3533_s11 + $0xb4] sm:$0xff]   ;;  %v179_v6 = vld [vmem:[%s3533_s11 + $0x24] sm:$0xff]   ;;  %p3397_p2 = por %p3396_p1, %p3395_p0 }
  0x20   : > { %305 = vst.msk [vmem:[#allocation2 + $0xc8] sm:$0xff] %vm278_vm1, %v3303_v16  ;;  %v3314_v54 = vunpack.c.l.bf16 %v3326_v48  ;;  %v3315_v55 = vunpack.c.h.bf16 %v3326_v48  ;;  %v3290_v57 = vunpack.c.l.bf16 %v3320_v53  ;;  %v3291_v58 = vunpack.c.h.bf16 %v3320_v53  ;;  %p3393_p13 = pneg %p3392_p12 }
  0x21   : > { %316 = vst.msk [vmem:[#allocation2 + $0x120] sm:$0xff] %vm278_vm1, %v3310_v18  ;;  %v245_v62 = vunpack.c.l.bf16 %v191_v56  ;;  %v246_v63 = vunpack.c.h.bf16 %v191_v56  ;;  %v257_v3 = vunpack.c.l.bf16 %v203_v59  ;;  %v258_v5 = vunpack.c.h.bf16 %v203_v59  ;;  %v172_v18 = vld [vmem:[%s3533_s11 + $0x8] sm:$0x1] }
  0x22   : > { %317 = vst.msk [vmem:[#allocation2 + $0x128] sm:$0xff] %vm278_vm1, %v3311_v19  ;;  %v269_v9 = vunpack.c.l.bf16 %v215_v0  ;;  %v270_v11 = vunpack.c.h.bf16 %v215_v0  ;;  %v233_v14 = vunpack.c.l.bf16 %v179_v6  ;;  %v234_v16 = vunpack.c.h.bf16 %v179_v6  ;;  %p3398_p3 = pnand %p3397_p2, %p3393_p13 }
  0x23   : > { %279 = vst.msk [vmem:[#allocation2] sm:$0xff] %vm278_vm1, %v3286_v21  ;;  %v226_v19 = vunpack.c.l.bf16 %v172_v18 }
  0x24   : > { %v374_v28 = vld [vmem:[#allocation2 + $0x60] sm:$0xff]  ;;  %280 = vst.msk [vmem:[#allocation2 + $0x8] sm:$0xff] %vm278_vm1, %v3287_v22  ;;  %v175_v22 = vld [vmem:[%s3533_s11 + $0x14] sm:$0x1] }
  0x25   : > { %v375_v31 = vld [vmem:[#allocation2 + $0x68] sm:$0xff]  ;;  %295 = vst.msk [vmem:[#allocation2 + $0x78] sm:$0xff] %vm278_vm1, %v239_v24  ;;  %v229_v23 = vunpack.c.l.bf16 %v175_v22 }
  0x26   : > { %v3552_v33 = vpack.c.bf16 %v375_v31, %v374_v28  ;;  %v382_v34 = vld [vmem:[#allocation2 + $0xc0] sm:$0xff]  ;;  %296 = vst.msk [vmem:[#allocation2 + $0x80] sm:$0xff] %vm278_vm1, %v240_v25 }
  0x27   : > { %v383_v37 = vld [vmem:[#allocation2 + $0xc8] sm:$0xff]  ;;  %307 = vst.msk [vmem:[#allocation2 + $0xd8] sm:$0xff] %vm278_vm1, %v251_v27 }
  0x28   : > { %3130 = vmatmul.msk.bf16.vlgmr.msra.gmra.mxu1 %vm278_vm1, %v3552_v33  ;;  %v3559_v39 = vpack.c.bf16 %v383_v37, %v382_v34  ;;  %v390_v40 = vld [vmem:[#allocation2 + $0x120] sm:$0xff]  ;;  %308 = vst.msk [vmem:[#allocation2 + $0xe0] sm:$0xff] %vm278_vm1, %v252_v29  ;;  %v3244_v37 = vld [vmem:[%s4295_s1 + $0xe] sm:$0x3] }
  0x29   : > { %v391_v43 = vld [vmem:[#allocation2 + $0x128] sm:$0xff]  ;;  %319 = vst.msk [vmem:[#allocation2 + $0x138] sm:$0xff] %vm278_vm1, %v263_v32 }
  0x2a   : > { %3134 = vmatmul.msk.bf16.vlgmr.msra.gmra.mxu2 %vm278_vm1, %v3559_v39  ;;  %v3566_v45 = vpack.c.bf16 %v391_v43, %v390_v40  ;;  %v366_v46 = vld [vmem:[#allocation2] sm:$0xff]  ;;  %320 = vst.msk [vmem:[#allocation2 + $0x140] sm:$0xff] %vm278_vm1, %v264_v35  ;;  %v3227_v35 = vld [vmem:[%s4295_s1 + $0xc] sm:$0x3]  ;;  %v3261_v40 = vld [vmem:[%s4295_s1 + $0x10] sm:$0x3] }
  0x2b   : > { %v367_v49 = vld [vmem:[#allocation2 + $0x8] sm:$0xff]  ;;  %283 = vst.msk [vmem:[#allocation2 + $0x18] sm:$0xff] %vm278_vm1, %v227_v38  ;;  %v2215_v36 = vsel %vm495_vm0, %v3227_v35, 0  ;;  %v2787_v43 = vsel %vm495_vm0, %v3261_v40, 0 }
  0x2c   : > { %3138 = vmatmul.msk.bf16.vlgmr.msra.gmra.mxu3 %vm278_vm1, %v3566_v45  ;;  %v398_v51 = vpack.c.bf16 %v367_v49, %v366_v46  ;;  %284 = vst.msk [vmem:[#allocation2 + $0x20] sm:$0xff] %vm278_vm1, %v228_v41  ;;  %v376_v60 = vld [vmem:[#allocation2 + $0x78] sm:$0xff]  ;;  %2224 = vmatpush.bf16.msra.mxu2 %v2215_v36  ;;  %v3210_v38 = vld [vmem:[%s4295_s1 + $0xa] sm:$0x3]  ;;  %v2501_v41 = vsel %vm495_vm0, %v3244_v37, 0  ;;  %v652_v59 = vld [vmem:[#allocation2 + $0x1] sm:$0xff] }
  0x2d   : > { %298 = vst.msk [vmem:[#allocation2 + $0x90] sm:$0xff] %vm278_vm1, %v3298_v44  ;;  %v377_v61 = vld [vmem:[#allocation2 + $0x80] sm:$0xff]  ;;  %v1928_v42 = vsel %vm495_vm0, %v3210_v38, 0  ;;  %2510 = vmatpush.bf16.msra.mxu3 %v2501_v41  ;;  %v193_v37 = vld [vmem:[%s3533_s11 + $0x5c] sm:$0x1] }
  0x2e   : > { %3126 = vmatmul.msk.bf16.vlgmr.msra.gmra.mxu0 %vm278_vm1, %v398_v51  ;;  %299 = vst.msk [vmem:[#allocation2 + $0x98] sm:$0xff] %vm278_vm1, %v3299_v47  ;;  %v384_v1 = vld [vmem:[#allocation2 + $0xd8] sm:$0xff]  ;;  %v3586_v4 = vpack.c.bf16 %v377_v61, %v376_v60  ;;  %1937 = vmatpush.bf16.msra.mxu1 %v1928_v42  ;;  %v178_v47 = vld [vmem:[%s3533_s11 + $0x20] sm:$0x1]  ;;  %v181_v61 = vld [vmem:[%s3533_s11 + $0x2c] sm:$0x1]  ;;  %v247_v38 = vunpack.c.l.bf16 %v193_v37 }
  0x2f   : > { %310 = vst.msk [vmem:[#allocation2 + $0xf0] sm:$0xff] %vm278_vm1, %v3306_v50  ;;  %v385_v2 = vld [vmem:[#allocation2 + $0xe0] sm:$0xff]  ;;  %2796 = vmatpush.bf16.msra.mxu0 %v2787_v43  ;;  %v232_v48 = vunpack.c.l.bf16 %v178_v47 }
  0x30   : > { %311 = vst.msk [vmem:[#allocation2 + $0xf8] sm:$0xff] %vm278_vm1, %v3307_v52  ;;  %v392_v7 = vld [vmem:[#allocation2 + $0x138] sm:$0xff]  ;;  %v3591_v10 = vpack.c.bf16 %v385_v2, %v384_v1  ;;  %v946_v40 = vld [vmem:[#allocation2 + $0x62] sm:$0xff] }
  0x31   : > { %322 = vst.msk [vmem:[#allocation2 + $0x150] sm:$0xff] %vm278_vm1, %v3314_v54  ;;  %v393_v8 = vld [vmem:[#allocation2 + $0x140] sm:$0xff] }
  0x32   : > { %323 = vst.msk [vmem:[#allocation2 + $0x158] sm:$0xff] %vm278_vm1, %v3315_v55  ;;  %v368_v12 = vld [vmem:[#allocation2 + $0x18] sm:$0xff]  ;;  %v3597_v15 = vpack.c.bf16 %v393_v8, %v392_v7 }
  0x33   : > { %286 = vst.msk [vmem:[#allocation2 + $0x30] sm:$0xff] %vm278_vm1, %v3290_v57  ;;  %v369_v13 = vld [vmem:[#allocation2 + $0x20] sm:$0xff]  ;;  %v184_v7 = vld [vmem:[%s3533_s11 + $0x38] sm:$0x1] }
  0x34   : > { %287 = vst.msk [vmem:[#allocation2 + $0x38] sm:$0xff] %vm278_vm1, %v3291_v58  ;;  %v3603_v17 = vpack.c.bf16 %v369_v13, %v368_v12  ;;  %v378_v20 = vld [vmem:[#allocation2 + $0x90] sm:$0xff]  ;;  %v238_v8 = vunpack.c.l.bf16 %v184_v7 }
  0x35   : > { %301 = vst.msk [vmem:[#allocation2 + $0xa8] sm:$0xff] %vm278_vm1, %v245_v62  ;;  %v379_v21 = vld [vmem:[#allocation2 + $0x98] sm:$0xff]  ;;  %v235_v62 = vunpack.c.l.bf16 %v181_v61  ;;  %v199_v7 = vld [vmem:[%s3533_s11 + $0x74] sm:$0x1] }
  0x36   : > { %302 = vst.msk [vmem:[#allocation2 + $0xb0] sm:$0xff] %vm278_vm1, %v246_v63  ;;  %v386_v24 = vld [vmem:[#allocation2 + $0xf0] sm:$0xff]  ;;  %v3615_v26 = vpack.c.bf16 %v379_v21, %v378_v20  ;;  %v938_v63 = vld [vmem:[#allocation2 + $0x2] sm:$0xff] }
  0x37   : > { %313 = vst.msk [vmem:[#allocation2 + $0x108] sm:$0xff] %vm278_vm1, %v257_v3  ;;  %v387_v25 = vld [vmem:[#allocation2 + $0xf8] sm:$0xff] }
  0x38   : > { %3131 = vmatmul.msk.bf16.gmra.mxu1 %vm278_vm1, %v3586_v4  ;;  %314 = vst.msk [vmem:[#allocation2 + $0x110] sm:$0xff] %vm278_vm1, %v258_v5  ;;  %v394_v27 = vld [vmem:[#allocation2 + $0x150] sm:$0xff]  ;;  %v3618_v29 = vpack.c.bf16 %v387_v25, %v386_v24  ;;  %v1511_v3 = vld [vmem:[#allocation2 + $0x19] sm:$0xff] }
  0x39   : > { %325 = vst.msk [vmem:[#allocation2 + $0x168] sm:$0xff] %vm278_vm1, %v269_v9  ;;  %v395_v28 = vld [vmem:[#allocation2 + $0x158] sm:$0xff]  ;;  %v190_v25 = vld [vmem:[%s3533_s11 + $0x50] sm:$0x1] }
  0x3a   : > { %3135 = vmatmul.msk.bf16.gmra.mxu2 %vm278_vm1, %v3591_v10  ;;  %326 = vst.msk [vmem:[#allocation2 + $0x170] sm:$0xff] %vm278_vm1, %v270_v11  ;;  %v370_v30 = vld [vmem:[#allocation2 + $0x30] sm:$0xff]  ;;  %v3622_v32 = vpack.c.bf16 %v395_v28, %v394_v27  ;;  %v940_v9 = vld [vmem:[#allocation2 + $0x1a] sm:$0xff]  ;;  %v244_v27 = vunpack.c.l.bf16 %v190_v25 }
  0x3b   : > { %289 = vst.msk [vmem:[#allocation2 + $0x48] sm:$0xff] %vm278_vm1, %v233_v14  ;;  %v371_v31 = vld [vmem:[#allocation2 + $0x38] sm:$0xff] }
  0x3c   : > { %3139 = vmatmul.msk.bf16.gmra.mxu3 %vm278_vm1, %v3597_v15  ;;  %290 = vst.msk [vmem:[#allocation2 + $0x50] sm:$0xff] %vm278_vm1, %v234_v16  ;;  %v400_v34 = vpack.c.bf16 %v371_v31, %v370_v30  ;;  %v380_v44 = vld [vmem:[#allocation2 + $0xa8] sm:$0xff]  ;;  %v1513_v13 = vld [vmem:[#allocation2 + $0x31] sm:$0xff] }
  0x3d   : > { %282 = vst.msk [vmem:[#allocation2 + $0x10] sm:$0x3] %vm281_vm2, %v226_v19  ;;  %v381_v46 = vld [vmem:[#allocation2 + $0xb0] sm:$0xff] }
  0x3e   : > { %3127 = vmatmul.msk.bf16.gmra.mxu0 %vm278_vm1, %v3603_v17  ;;  %285 = vst.msk [vmem:[#allocation2 + $0x28] sm:$0x3] %vm281_vm2, %v229_v23  ;;  %v388_v49 = vld [vmem:[#allocation2 + $0x108] sm:$0xff]  ;;  %v3646_v51 = vpack.c.bf16 %v381_v46, %v380_v44  ;;  %v942_v19 = vld [vmem:[#allocation2 + $0x32] sm:$0xff] }
  0x3f   : > { %v389_v50 = vld [vmem:[#allocation2 + $0x110] sm:$0xff]  ;;  %288 = vst.msk [vmem:[#allocation2 + $0x40] sm:$0x3] %vm281_vm2, %v232_v48  ;;  %v1519_v44 = vld [vmem:[#allocation2 + $0x79] sm:$0xff] }
  0x40   : > { %v396_v52 = vld [vmem:[#allocation2 + $0x168] sm:$0xff]  ;;  %v3649_v54 = vpack.c.bf16 %v389_v50, %v388_v49  ;;  %291 = vst.msk [vmem:[#allocation2 + $0x58] sm:$0x3] %vm281_vm2, %v235_v62 }
  0x41   : > { %v397_v53 = vld [vmem:[#allocation2 + $0x170] sm:$0xff]  ;;  %294 = vst.msk [vmem:[#allocation2 + $0x70] sm:$0x3] %vm281_vm2, %v238_v8  ;;  %v253_v8 = vunpack.c.l.bf16 %v199_v7  ;;  %v205_v7 = vld [vmem:[%s3533_s11 + $0x8c] sm:$0x1] }
  0x42   : > { %v372_v55 = vld [vmem:[#allocation2 + $0x48] sm:$0xff]  ;;  %v3653_v57 = vpack.c.bf16 %v397_v53, %v396_v52  ;;  %300 = vst.msk [vmem:[#allocation2 + $0xa0] sm:$0x3] %vm281_vm2, %v244_v27 }
  0x43   : > { %v373_v56 = vld [vmem:[#allocation2 + $0x50] sm:$0xff]  ;;  %303 = vst.msk [vmem:[#allocation2 + $0xb8] sm:$0x3] %vm281_vm2, %v247_v38  ;;  %v196_v52 = vld [vmem:[%s3533_s11 + $0x68] sm:$0x1] }
  0x44   : > { %v3657_v58 = vpack.c.bf16 %v373_v56, %v372_v55  ;;  %v653_v60 = vld [vmem:[#allocation2 + $0x9] sm:$0xff]  ;;  %v250_v53 = vunpack.c.l.bf16 %v196_v52  ;;  %v948_v56 = vld [vmem:[#allocation2 + $0x7a] sm:$0xff]  ;;  %309 = vst.msk [vmem:[#allocation2 + $0xe8] sm:$0x3] %vm281_vm2, %v253_v8  ;;  %v259_v8 = vunpack.c.l.bf16 %v205_v7 }
  0x45   : > { %v939_v0 = vld [vmem:[#allocation2 + $0xa] sm:$0xff]  ;;  %v684_v1 = vpack.c.bf16 %v653_v60, %v652_v59  ;;  %v1512_v5 = vld [vmem:[#allocation2 + $0x21] sm:$0xff] }
  0x46   : > { %v970_v2 = vpack.c.bf16 %v939_v0, %v938_v63  ;;  %v1543_v6 = vpack.c.bf16 %v1512_v5, %v1511_v3  ;;  %v941_v11 = vld [vmem:[#allocation2 + $0x22] sm:$0xff]  ;;  %v1514_v14 = vld [vmem:[#allocation2 + $0x39] sm:$0xff]  ;;  %v944_v28 = vld [vmem:[#allocation2 + $0x4a] sm:$0xff]  ;;  %306 = vst.msk [vmem:[#allocation2 + $0xd0] sm:$0x3] %vm281_vm2, %v250_v53 }
  0x47   : > { %v3672_v12 = vpack.c.bf16 %v941_v11, %v940_v9  ;;  %v3677_v16 = vpack.c.bf16 %v1514_v14, %v1513_v13  ;;  %v943_v20 = vld [vmem:[#allocation2 + $0x3a] sm:$0xff]  ;;  %v1515_v22 = vld [vmem:[#allocation2 + $0x49] sm:$0xff]  ;;  %v1516_v23 = vld [vmem:[#allocation2 + $0x51] sm:$0xff]  ;;  %315 = vst.msk [vmem:[#allocation2 + $0x118] sm:$0x3] %vm281_vm2, %v259_v8 }
  0x48   : > { %3132 = vmatmul.msk.bf16.gmra.mxu1 %vm278_vm1, %v3615_v26  ;;  %v3684_v21 = vpack.c.bf16 %v943_v20, %v942_v19  ;;  %v3690_v24 = vpack.c.bf16 %v1516_v23, %v1515_v22  ;;  %v945_v30 = vld [vmem:[#allocation2 + $0x52] sm:$0xff]  ;;  %v1518_v35 = vld [vmem:[#allocation2 + $0x69] sm:$0xff] }
  0x49   : > { %v3698_v31 = vpack.c.bf16 %v945_v30, %v944_v28  ;;  %v947_v41 = vld [vmem:[#allocation2 + $0x6a] sm:$0xff]  ;;  %v1522_v0 = vld [vmem:[#allocation2 + $0x99] sm:$0xff] }
  0x4a   : > { %3136 = vmatmul.msk.bf16.gmra.mxu2 %vm278_vm1, %v3618_v29  ;;  %v3714_v43 = vpack.c.bf16 %v947_v41, %v946_v40  ;;  %v1521_v63 = vld [vmem:[#allocation2 + $0x91] sm:$0xff]  ;;  %v951_v13 = vld [vmem:[#allocation2 + $0x9a] sm:$0xff]  ;;  %v1523_v19 = vld [vmem:[#allocation2 + $0xa9] sm:$0xff] }
  0x4b   : > { %v950_v11 = vld [vmem:[#allocation2 + $0x92] sm:$0xff]  ;;  %v202_v30 = vld [vmem:[%s3533_s11 + $0x80] sm:$0x1]  ;;  %v952_v37 = vld [vmem:[#allocation2 + $0xaa] sm:$0xff] }
  0x4c   : > { %3140 = vmatmul.msk.bf16.gmra.mxu3 %vm278_vm1, %v3622_v32  ;;  %v1524_v20 = vld [vmem:[#allocation2 + $0xb1] sm:$0xff] }
  0x4d   : > { %v3780_v22 = vpack.c.bf16 %v1524_v20, %v1523_v19  ;;  %v953_v38 = vld [vmem:[#allocation2 + $0xb2] sm:$0xff]  ;;  %v1526_v52 = vld [vmem:[#allocation2 + $0xc9] sm:$0xff] }
  0x4e   : > { %3128 = vmatmul.msk.bf16.gmra.mxu0 %vm278_vm1, %v400_v34  ;;  %v3802_v41 = vpack.c.bf16 %v953_v38, %v952_v37  ;;  %v955_v19 = vld [vmem:[#allocation2 + $0xca] sm:$0xff]  ;;  %v1527_v38 = vld [vmem:[#allocation2 + $0xd9] sm:$0xff] }
  0x4f   : > { %4307 = vst [vmem:[#allocation8_spill] sm:$0xff] %v3780_v22 }
  0x50   : > { %4309 = vst [vmem:[#allocation10_spill] sm:$0xff] %v3802_v41 }
  0x58   : > { %3133 = vmatmul.msk.bf16.gmra.mxu1 %vm278_vm1, %v3646_v51 }
  0x5a   : > { %3137 = vmatmul.msk.bf16.gmra.mxu2 %vm278_vm1, %v3649_v54 }
  0x5c   : > { %3141 = vmatmul.msk.bf16.gmra.mxu3 %vm278_vm1, %v3653_v57 }
  0x5e   : > { %3129 = vmatmul.msk.bf16.gmra.mxu0 %vm278_vm1, %v3657_v58 }
  0x68   : > { %3143 = vmatmul.msk.bf16.vlgmr.msrb.gmra.mxu1 %vm278_vm1, %v684_v1  ;;  %v3750_v1 = vpack.c.bf16 %v1522_v0, %v1521_v63 }
  0x6a   : > { %3160 = vmatmul.msk.bf16.vlgmr.msrb.gmra.mxu2 %vm278_vm1, %v970_v2 }
  0x6c   : > { %3177 = vmatmul.msk.bf16.vlgmr.msrb.gmra.mxu3 %vm278_vm1, %v3603_v17  ;;  %v187_v17 = vld [vmem:[%s3533_s11 + $0x44] sm:$0x1] }
  0x6d   : > { %v241_v18 = vunpack.c.l.bf16 %v187_v17  ;;  %v3772_v17 = vpack.c.bf16 %v951_v13, %v950_v11  ;;  %v954_v13 = vld [vmem:[#allocation2 + $0xc2] sm:$0xff] }
  0x6e   : > { %3194 = vmatmul.msk.bf16.vlgmr.msrb.gmra.mxu0 %vm278_vm1, %v1543_v6 }
  0x6f   : > { %297 = vst.msk [vmem:[#allocation2 + $0x88] sm:$0x3] %vm281_vm2, %v241_v18 }
  0x76   : > { %v1520_v46 = vld [vmem:[#allocation2 + $0x81] sm:$0xff] }
  0x77   : > { %v949_v59 = vld [vmem:[#allocation2 + $0x82] sm:$0xff] }
  0x78   : > { %3144 = vmatmul.msk.bf16.gmra.mxu1 %vm278_vm1, %v1543_v6  ;;  %v3742_v61 = vpack.c.bf16 %v949_v59, %v948_v56 }
  0x7a   : > { %3161 = vmatmul.msk.bf16.gmra.mxu2 %vm278_vm1, %v3672_v12 }
  0x7c   : > { %3178 = vmatmul.msk.bf16.gmra.mxu3 %vm278_vm1, %v400_v34  ;;  %v1517_v34 = vld [vmem:[#allocation2 + $0x61] sm:$0xff] }
  0x7d   : > { %v3704_v36 = vpack.c.bf16 %v1518_v35, %v1517_v34  ;;  %v256_v34 = vunpack.c.l.bf16 %v202_v30 }
  0x7e   : > { %3195 = vmatmul.msk.bf16.gmra.mxu0 %vm278_vm1, %v3677_v16 }
  0x7f   : > { %312 = vst.msk [vmem:[#allocation2 + $0x100] sm:$0x3] %vm281_vm2, %v256_v34  ;;  %v3831_v34 = vpack.c.bf16 %v955_v19, %v954_v13 }
  0x81   : > { %4313 = vst [vmem:[#allocation14_spill] sm:$0xff] %v3831_v34 }
  0x88   : > { %3145 = vmatmul.msk.bf16.gmra.mxu1 %vm278_vm1, %v3677_v16 }
  0x8a   : > { %3162 = vmatmul.msk.bf16.gmra.mxu2 %vm278_vm1, %v3684_v21 }
  0x8c   : > { %3179 = vmatmul.msk.bf16.gmra.mxu3 %vm278_vm1, %v3657_v58 }
  0x8e   : > { %3196 = vmatmul.msk.bf16.gmra.mxu0 %vm278_vm1, %v3690_v24 }
  0x98   : > { %3146 = vmatmul.msk.bf16.gmra.mxu1 %vm278_vm1, %v3690_v24 }
  0x9a   : > { %3163 = vmatmul.msk.bf16.gmra.mxu2 %vm278_vm1, %v3698_v31 }
  0x9c   : > { %3180 = vmatmul.msk.bf16.gmra.mxu3 %vm278_vm1, %v3552_v33  ;;  %v3720_v33 = vpack.c.bf16 %v1520_v46, %v1519_v44  ;;  %v1525_v46 = vld [vmem:[#allocation2 + $0xc1] sm:$0xff] }
  0x9d   : > { %v3810_v53 = vpack.c.bf16 %v1526_v52, %v1525_v46  ;;  %v1528_v46 = vld [vmem:[#allocation2 + $0xe1] sm:$0xff] }
  0x9e   : > { %3197 = vmatmul.msk.bf16.gmra.mxu0 %vm278_vm1, %v3704_v36  ;;  %v3839_v52 = vpack.c.bf16 %v1528_v46, %v1527_v38  ;;  %v956_v46 = vld [vmem:[#allocation2 + $0xda] sm:$0xff] }
  0x9f   : > { %4311 = vst [vmem:[#allocation12_spill] sm:$0xff] %v3810_v53 }
  0xa5   : > { %v3712_v42 = vpop.f32.mrf.mxu1 }
  0xa8   : > { %3147 = vmatmul.msk.bf16.gmra.mxu1 %vm278_vm1, %v3704_v36 }
  0xaa   : > { %3164 = vmatmul.msk.bf16.gmra.mxu2 %vm278_vm1, %v3714_v43 }
  0xab   : > { %v3722_v47 = vpop.f32.mrf.mxu0 }
  0xac   : > { %3181 = vmatmul.msk.bf16.gmra.mxu3 %vm278_vm1, %v3586_v4 }
  0xad   : > { %v3726_v48 = vpop.f32.mrf.mxu2  ;;  %v3728_v49 = vpop.f32.mrf.mxu1 }
  0xae   : > { %3198 = vmatmul.msk.bf16.gmra.mxu0 %vm278_vm1, %v3720_v33 }
  0xaf   : > { %v3732_v50 = vpop.f32.mrf.mxu3 }
  0xb3   : > { %v3735_v55 = vpop.f32.mrf.mxu0 }
  0xb5   : > { %v3738_v60 = vpop.f32.mrf.mxu2  ;;  %v3740_v4 = vpop.f32.mrf.mxu1 }
  0xb7   : > { %v3744_v62 = vpop.f32.mrf.mxu3 }
  0xb8   : > { %3148 = vmatmul.msk.bf16.gmra.mxu1 %vm278_vm1, %v3720_v33 }
  0xba   : > { %3165 = vmatmul.msk.bf16.gmra.mxu2 %vm278_vm1, %v3742_v61 }
  0xbb   : > { %v3752_v2 = vpop.f32.mrf.mxu0 }
  0xbc   : > { %3182 = vmatmul.msk.bf16.gmra.mxu3 %vm278_vm1, %v3615_v26 }
  0xbd   : > { %v3756_v3 = vpop.f32.mrf.mxu2  ;;  %v3758_v5 = vpop.f32.mrf.mxu1 }
  0xbe   : > { %3199 = vmatmul.msk.bf16.gmra.mxu0 %vm278_vm1, %v3750_v1 }
  0xbf   : > { %v3762_v6 = vpop.f32.mrf.mxu3 }
  0xc3   : > { %v3765_v9 = vpop.f32.mrf.mxu0 }
  0xc5   : > { %v3768_v14 = vpop.f32.mrf.mxu2  ;;  %v3770_v26 = vpop.f32.mrf.mxu1 }
  0xc7   : > { %v3774_v18 = vpop.f32.mrf.mxu3 }
  0xc8   : > { %4306 = vst [vmem:[#allocation7_spill] sm:$0xff] %v3774_v18  ;;  %3149 = vmatmul.msk.bf16.gmra.mxu1 %vm278_vm1, %v3750_v1 }
  0xca   : > { %3166 = vmatmul.msk.bf16.gmra.mxu2 %vm278_vm1, %v3772_v17 }
  0xcb   : > { %v3782_v23 = vpop.f32.mrf.mxu0 }
  0xcc   : > { %3183 = vmatmul.msk.bf16.gmra.mxu3 %vm278_vm1, %v3646_v51 }
  0xcd   : > { %v3786_v25 = vpop.f32.mrf.mxu2  ;;  %v3788_v27 = vpop.f32.mrf.mxu1 }
  0xce   : > { %3200 = vmatmul.msk.bf16.gmra.mxu0 %vm278_vm1, %v3780_v22 }
  0xcf   : > { %v3792_v28 = vpop.f32.mrf.mxu3 }
  0xd0   : > { %4308 = vst [vmem:[#allocation9_spill] sm:$0xff] %v3792_v28 }
  0xd3   : > { %v3795_v35 = vpop.f32.mrf.mxu0 }
  0xd5   : > { %v3798_v40 = vpop.f32.mrf.mxu2  ;;  %v3800_v51 = vpop.f32.mrf.mxu1 }
  0xd7   : > { %v3804_v44 = vpop.f32.mrf.mxu3 }
  0xd8   : > { %4310 = vst [vmem:[#allocation11_spill] sm:$0xff] %v3804_v44  ;;  %3150 = vmatmul.msk.bf16.gmra.mxu1 %vm278_vm1, %v3780_v22 }
  0xda   : > { %3167 = vmatmul.msk.bf16.gmra.mxu2 %vm278_vm1, %v3802_v41 }
  0xdb   : > { %v3812_v56 = vpop.f32.mrf.mxu0 }
  0xdc   : > { %3184 = vmatmul.msk.bf16.gmra.mxu3 %vm278_vm1, %v3559_v39 }
  0xdd   : > { %v3816_v59 = vpop.f32.mrf.mxu2  ;;  %v3818_v63 = vpop.f32.mrf.mxu1 }
  0xde   : > { %3201 = vmatmul.msk.bf16.gmra.mxu0 %vm278_vm1, %v3810_v53 }
  0xdf   : > { %v3822_v0 = vpop.f32.mrf.mxu3 }
  0xe0   : > { %4312 = vst [vmem:[#allocation13_spill] sm:$0xff] %v3822_v0  ;;  %v208_v0 = vld [vmem:[%s3533_s11 + $0x98] sm:$0x1] }
  0xe1   : > { %v262_v44 = vunpack.c.l.bf16 %v208_v0 }
  0xe3   : > { %v3825_v11 = vpop.f32.mrf.mxu0  ;;  %318 = vst.msk [vmem:[#allocation2 + $0x130] sm:$0x3] %vm281_vm2, %v262_v44 }
  0xe5   : > { %v3828_v20 = vpop.f32.mrf.mxu2  ;;  %v794_v39 = vpop.f32.mrf.mxu1 }
  0xe6   : > { %v874_v30 = vadd.f32 %v794_v39, %v3722_v47 }
  0xe7   : > { %v3833_v37 = vpop.f32.mrf.mxu3 }
  0xe8   : > { %4314 = vst [vmem:[#allocation15_spill] sm:$0xff] %v3833_v37  ;;  %3151 = vmatmul.msk.bf16.gmra.mxu1 %vm278_vm1, %v3810_v53 }
  0xea   : > { %3168 = vmatmul.msk.bf16.gmra.mxu2 %vm278_vm1, %v3831_v34  ;;  %v957_v34 = vld [vmem:[#allocation2 + $0xe2] sm:$0xff] }
  0xeb   : > { %v1653_v7 = vpop.f32.mrf.mxu0  ;;  %v3851_v22 = vpack.c.bf16 %v957_v34, %v956_v46 }
  0xec   : > { %3185 = vmatmul.msk.bf16.gmra.mxu3 %vm278_vm1, %v3591_v10 }
  0xed   : > { %v1080_v47 = vpop.f32.mrf.mxu2  ;;  %v796_v8 = vpop.f32.mrf.mxu1 }
  0xee   : > { %3202 = vmatmul.msk.bf16.gmra.mxu0 %vm278_vm1, %v3839_v52  ;;  %v1160_v13 = vadd.f32 %v1080_v47, %v874_v30  ;;  %v875_v19 = vadd.f32 %v796_v8, %v3735_v55  ;;  %v1529_v55 = vld [vmem:[#allocation2 + $0xf1] sm:$0xff]  ;;  %v1530_v47 = vld [vmem:[#allocation2 + $0xf9] sm:$0xff] }
  0xef   : > { %v1367_v39 = vpop.f32.mrf.mxu3  ;;  %v3857_v0 = vpack.c.bf16 %v1530_v47, %v1529_v55 }
  0xf0   : > { %v1447_v37 = vadd.f32 %v1367_v39, %v1160_v13 }
  0xf2   : > { %v3847_v53 = vadd.f32 %v1653_v7, %v1447_v37 }
  0xf3   : > { %v1655_v38 = vpop.f32.mrf.mxu0 }
  0xf5   : > { %v1082_v10 = vpop.f32.mrf.mxu2  ;;  %v799_v28 = vpop.f32.mrf.mxu1 }
  0xf6   : > { %v1161_v18 = vadd.f32 %v1082_v10, %v875_v19  ;;  %v876_v41 = vadd.f32 %v799_v28, %v3752_v2  ;;  %v211_v19 = vld [vmem:[%s3533_s11 + $0xa4] sm:$0x1]  ;;  %v958_v10 = vld [vmem:[#allocation2 + $0xf2] sm:$0xff] }
  0xf7   : > { %v1369_v30 = vpop.f32.mrf.mxu3  ;;  %v265_v39 = vunpack.c.l.bf16 %v211_v19 }
  0xf8   : > { %v1448_v8 = vadd.f32 %v1369_v30, %v1161_v18  ;;  %3152 = vmatmul.msk.bf16.gmra.mxu1 %vm278_vm1, %v3839_v52  ;;  %v959_v30 = vld [vmem:[#allocation2 + $0xfa] sm:$0xff] }
  0xf9   : > { %321 = vst.msk [vmem:[#allocation2 + $0x148] sm:$0x3] %vm281_vm2, %v265_v39 }
  0xfa   : > { %3169 = vmatmul.msk.bf16.gmra.mxu2 %vm278_vm1, %v3851_v22  ;;  %v3859_v44 = vadd.f32 %v1655_v38, %v1448_v8 }
  0xfb   : > { %v1658_v37 = vpop.f32.mrf.mxu0 }
  0xfc   : > { %4315 = vst [vmem:[#allocation16_spill] sm:$0xff] %v3859_v44  ;;  %3186 = vmatmul.msk.bf16.gmra.mxu3 %vm278_vm1, %v3618_v29  ;;  %v3871_v44 = vpack.c.bf16 %v959_v30, %v958_v10  ;;  %v214_v30 = vld [vmem:[%s3533_s11 + $0xb0] sm:$0x1] }
  0xfd   : > { %v1085_v2 = vpop.f32.mrf.mxu2  ;;  %v801_v28 = vpop.f32.mrf.mxu1 }
  0xfe   : > { %3203 = vmatmul.msk.bf16.gmra.mxu0 %vm278_vm1, %v3857_v0  ;;  %v1162_v18 = vadd.f32 %v1085_v2, %v876_v41  ;;  %v877_v34 = vadd.f32 %v801_v28, %v3765_v9  ;;  %v1531_v9 = vld [vmem:[#allocation2 + $0x109] sm:$0xff]  ;;  %v1532_v2 = vld [vmem:[#allocation2 + $0x111] sm:$0xff] }
  0xff   : > { %v1372_v7 = vpop.f32.mrf.mxu3 }
 0x100   : > { %v1449_v13 = vadd.f32 %v1372_v7, %v1162_v18 }
 0x102   : > { %v3867_v46 = vadd.f32 %v1658_v37, %v1449_v13  ;;  %v3877_v37 = vpack.c.bf16 %v1532_v2, %v1531_v9 }
 0x103   : > { %v1660_v38 = vpop.f32.mrf.mxu0 }
 0x105   : > { %v1087_v29 = vpop.f32.mrf.mxu2  ;;  %v804_v55 = vpop.f32.mrf.mxu1 }
 0x106   : > { %v1163_v47 = vadd.f32 %v1087_v29, %v877_v34  ;;  %v878_v8 = vadd.f32 %v804_v55, %v3782_v23  ;;  %v268_v29 = vunpack.c.l.bf16 %v214_v30 }
 0x107   : > { %v1374_v41 = vpop.f32.mrf.mxu3 }
 0x108   : > { %v1450_v28 = vadd.f32 %v1374_v41, %v1163_v47  ;;  %3153 = vmatmul.msk.bf16.gmra.mxu1 %vm278_vm1, %v3857_v0  ;;  %v960_v47 = vld [vmem:[#allocation2 + $0x10a] sm:$0xff]  ;;  %v961_v41 = vld [vmem:[#allocation2 + $0x112] sm:$0xff]  ;;  %324 = vst.msk [vmem:[#allocation2 + $0x160] sm:$0x3] %vm281_vm2, %v268_v29 }
 0x10a   : > { %3170 = vmatmul.msk.bf16.gmra.mxu2 %vm278_vm1, %v3871_v44  ;;  %v3879_v18 = vadd.f32 %v1660_v38, %v1450_v28 }
 0x10b   : > { %v1663_v34 = vpop.f32.mrf.mxu0 }
 0x10c   : > { %4316 = vst [vmem:[#allocation17_spill] sm:$0xff] %v3879_v18  ;;  %3187 = vmatmul.msk.bf16.gmra.mxu3 %vm278_vm1, %v3649_v54  ;;  %v3891_v18 = vpack.c.bf16 %v961_v41, %v960_v47  ;;  %v217_v41 = vld [vmem:[%s3533_s11 + $0xbc] sm:$0x1] }
 0x10d   : > { %v1090_v23 = vpop.f32.mrf.mxu2  ;;  %v806_v7 = vpop.f32.mrf.mxu1 }
 0x10e   : > { %3204 = vmatmul.msk.bf16.gmra.mxu0 %vm278_vm1, %v3877_v37  ;;  %v1164_v13 = vadd.f32 %v1090_v23, %v878_v8  ;;  %v879_v19 = vadd.f32 %v806_v7, %v3795_v35  ;;  %v1533_v35 = vld [vmem:[#allocation2 + $0x121] sm:$0xff]  ;;  %v1534_v23 = vld [vmem:[#allocation2 + $0x129] sm:$0xff] }
 0x10f   : > { %v1377_v39 = vpop.f32.mrf.mxu3 }
 0x110   : > { %v1451_v10 = vadd.f32 %v1377_v39, %v1164_v13 }
 0x112   : > { %v3887_v55 = vadd.f32 %v1663_v34, %v1451_v10  ;;  %v3897_v34 = vpack.c.bf16 %v1534_v23, %v1533_v35 }
 0x113   : > { %v1665_v38 = vpop.f32.mrf.mxu0 }
 0x115   : > { %v1092_v54 = vpop.f32.mrf.mxu2  ;;  %v809_v9 = vpop.f32.mrf.mxu1 }
 0x116   : > { %v1165_v2 = vadd.f32 %v1092_v54, %v879_v19  ;;  %v880_v28 = vadd.f32 %v809_v9, %v3812_v56  ;;  %v271_v54 = vunpack.c.l.bf16 %v217_v41 }
 0x117   : > { %v1379_v8 = vpop.f32.mrf.mxu3 }
 0x118   : > { %v1452_v7 = vadd.f32 %v1379_v8, %v1165_v2  ;;  %3154 = vmatmul.msk.bf16.gmra.mxu1 %vm278_vm1, %v3877_v37  ;;  %v962_v2 = vld [vmem:[#allocation2 + $0x122] sm:$0xff]  ;;  %v963_v8 = vld [vmem:[#allocation2 + $0x12a] sm:$0xff]  ;;  %327 = vst.msk [vmem:[#allocation2 + $0x178] sm:$0x3] %vm281_vm2, %v271_v54 }
 0x119   : > { %v3327_v54 = vld [vmem:[%s3533_s11 + $0xc0] sm:$0xff]  }
 0x11a   : > { %3171 = vmatmul.msk.bf16.gmra.mxu2 %vm278_vm1, %v3891_v18  ;;  %v3899_v13 = vadd.f32 %v1665_v38, %v1452_v7  ;;  %v3910_v7 = vpack.c.bf16 %v963_v8, %v962_v2  ;;  %v3318_v8 = vunpack.c.l.bf16 %v3327_v54 }
 0x11b   : > { %v1668_v19 = vpop.f32.mrf.mxu0 }
 0x11c   : > { %4317 = vst [vmem:[#allocation18_spill] sm:$0xff] %v3899_v13  ;;  %3188 = vmatmul.msk.bf16.gmra.mxu3 %vm278_vm1, %v3566_v45 }
 0x11d   : > { %v1095_v56 = vpop.f32.mrf.mxu2  ;;  %v811_v39 = vpop.f32.mrf.mxu1  ;;  %328 = vst.msk [vmem:[#allocation2 + $0x180] sm:$0xff] %vm278_vm1, %v3318_v8  ;;  %v1538_v8 = vld [vmem:[#allocation2 + $0x159] sm:$0xff] }
 0x11e   : > { %3205 = vmatmul.msk.bf16.gmra.mxu0 %vm278_vm1, %v3897_v34  ;;  %v1166_v10 = vadd.f32 %v1095_v56, %v880_v28  ;;  %v881_v30 = vadd.f32 %v811_v39, %v3825_v11  ;;  %v1535_v28 = vld [vmem:[#allocation2 + $0x139] sm:$0xff]  ;;  %v1536_v11 = vld [vmem:[#allocation2 + $0x141] sm:$0xff] }
 0x11f   : > { %v1382_v29 = vpop.f32.mrf.mxu3 }
 0x120   : > { %v1453_v47 = vadd.f32 %v1382_v29, %v1166_v10 }
 0x122   : > { %v3907_v9 = vadd.f32 %v1668_v19, %v1453_v47  ;;  %v3916_v19 = vpack.c.bf16 %v1536_v11, %v1535_v28 }
 0x123   : > { %v1670_v38 = vpop.f32.mrf.mxu0 }
 0x125   : > { %v1097_v45 = vpop.f32.mrf.mxu2  ;;  %v814_v35 = vpop.f32.mrf.mxu1 }
 0x126   : > { %v1167_v23 = vadd.f32 %v1097_v45, %v881_v30  ;;  %v882_v30 = vadd.f32 %v814_v35, %v3712_v42  ;;  %v3319_v45 = vunpack.c.h.bf16 %v3327_v54  ;;  %v964_v35 = vld [vmem:[#allocation2 + $0x13a] sm:$0xff]  ;;  %v1537_v54 = vld [vmem:[#allocation2 + $0x151] sm:$0xff] }
 0x127   : > { %v1384_v13 = vpop.f32.mrf.mxu3 }
 0x128   : > { %v1454_v56 = vadd.f32 %v1384_v13, %v1167_v23  ;;  %3155 = vmatmul.msk.bf16.gmra.mxu1 %vm278_vm1, %v3897_v34  ;;  %v220_v23 = vld [vmem:[%s3533_s11 + $0xc8] sm:$0x1]  ;;  %329 = vst.msk [vmem:[#allocation2 + $0x188] sm:$0xff] %vm278_vm1, %v3319_v45 }
 0x12a   : > { %3172 = vmatmul.msk.bf16.gmra.mxu2 %vm278_vm1, %v3910_v7  ;;  %v3918_v39 = vadd.f32 %v1670_v38, %v1454_v56  ;;  %v274_v38 = vunpack.c.l.bf16 %v220_v23 }
 0x12b   : > { %v1673_v10 = vpop.f32.mrf.mxu0 }
 0x12c   : > { %4318 = vst [vmem:[#allocation19_spill] sm:$0xff] %v3918_v39  ;;  %3189 = vmatmul.msk.bf16.gmra.mxu3 %vm278_vm1, %v3597_v15  ;;  %v965_v15 = vld [vmem:[#allocation2 + $0x142] sm:$0xff] }
 0x12d   : > { %v1100_v29 = vpop.f32.mrf.mxu2  ;;  %v816_v47 = vpop.f32.mrf.mxu1  ;;  %330 = vst.msk [vmem:[#allocation2 + $0x190] sm:$0x3] %vm281_vm2, %v274_v38 }
 0x12e   : > { %3206 = vmatmul.msk.bf16.gmra.mxu0 %vm278_vm1, %v3916_v19  ;;  %v1168_v13 = vadd.f32 %v1100_v29, %v882_v30  ;;  %v883_v11 = vadd.f32 %v816_v47, %v3728_v49 }
 0x12f   : > { %v1387_v41 = vpop.f32.mrf.mxu3 }
 0x130   : > { %v1455_v2 = vadd.f32 %v1387_v41, %v1168_v13  ;;  %v3933_v13 = vpack.c.bf16 %v965_v15, %v964_v35 }
 0x132   : > { %v3928_v28 = vadd.f32 %v1673_v10, %v1455_v2  ;;  %v3939_v10 = vpack.c.bf16 %v1538_v8, %v1537_v54 }
 0x133   : > { %v1675_v42 = vpop.f32.mrf.mxu0 }
 0x134   : > { %4319 = vst [vmem:[#allocation20_spill] sm:$0xff] %v3928_v28  ;;  %v1540_v28 = vld [vmem:[#allocation2 + $0x171] sm:$0xff] }
 0x135   : > { %v1102_v56 = vpop.f32.mrf.mxu2  ;;  %v819_v30 = vpop.f32.mrf.mxu1 }
 0x136   : > { %v1169_v29 = vadd.f32 %v1102_v56, %v883_v11  ;;  %v884_v2 = vadd.f32 %v819_v30, %v3740_v4 }
 0x137   : > { %v1389_v41 = vpop.f32.mrf.mxu3 }
 0x138   : > { %v1456_v23 = vadd.f32 %v1389_v41, %v1169_v29  ;;  %3156 = vmatmul.msk.bf16.gmra.mxu1 %vm278_vm1, %v3916_v19  ;;  %v966_v41 = vld [vmem:[#allocation2 + $0x152] sm:$0xff] }
 0x13a   : > { %3173 = vmatmul.msk.bf16.gmra.mxu2 %vm278_vm1, %v3933_v13  ;;  %v3941_v49 = vadd.f32 %v1675_v42, %v1456_v23  ;;  %v967_v42 = vld [vmem:[#allocation2 + $0x15a] sm:$0xff] }
 0x13b   : > { %v1678_v47 = vpop.f32.mrf.mxu0  ;;  %v3951_v23 = vpack.c.bf16 %v967_v42, %v966_v41 }
 0x13c   : > { %4320 = vst [vmem:[#allocation21_spill] sm:$0xff] %v3941_v49  ;;  %3190 = vmatmul.msk.bf16.gmra.mxu3 %vm278_vm1, %v3622_v32  ;;  %v1539_v49 = vld [vmem:[#allocation2 + $0x169] sm:$0xff] }
 0x13d   : > { %v1105_v45 = vpop.f32.mrf.mxu2  ;;  %v821_v38 = vpop.f32.mrf.mxu1 }
 0x13e   : > { %3207 = vmatmul.msk.bf16.gmra.mxu0 %vm278_vm1, %v3939_v10  ;;  %v1170_v35 = vadd.f32 %v1105_v45, %v884_v2  ;;  %v885_v54 = vadd.f32 %v821_v38, %v3758_v5 }
 0x13f   : > { %v1392_v15 = vpop.f32.mrf.mxu3 }
 0x140   : > { %v1457_v11 = vadd.f32 %v1392_v15, %v1170_v35 }
 0x142   : > { %v3948_v56 = vadd.f32 %v1678_v47, %v1457_v11  ;;  %v3957_v47 = vpack.c.bf16 %v1540_v28, %v1539_v49  ;;  %v968_v49 = vld [vmem:[#allocation2 + $0x16a] sm:$0xff] }
 0x143   : > { %v1680_v29 = vpop.f32.mrf.mxu0 }
 0x144   : > { %4321 = vst [vmem:[#allocation22_spill] sm:$0xff] %v3948_v56  ;;  %v1542_v56 = vld [vmem:[#allocation2 + $0x189] sm:$0xff] }
 0x145   : > { %v1107_v8 = vpop.f32.mrf.mxu2  ;;  %v824_v4 = vpop.f32.mrf.mxu1 }
 0x146   : > { %v1171_v30 = vadd.f32 %v1107_v8, %v885_v54  ;;  %v886_v45 = vadd.f32 %v824_v4, %v3770_v26  ;;  %v1255_v8 = vld [vmem:[#allocation2 + $0x180] sm:$0xff]  ;;  %v1256_v4 = vld [vmem:[#allocation2 + $0x188] sm:$0xff] }
 0x147   : > { %v1394_v32 = vpop.f32.mrf.mxu3 }
 0x148   : > { %v1458_v39 = vadd.f32 %v1394_v32, %v1171_v30  ;;  %3157 = vmatmul.msk.bf16.gmra.mxu1 %vm278_vm1, %v3939_v10 }
 0x14a   : > { %3174 = vmatmul.msk.bf16.gmra.mxu2 %vm278_vm1, %v3951_v23  ;;  %v3959_v2 = vadd.f32 %v1680_v29, %v1458_v39  ;;  %v969_v39 = vld [vmem:[#allocation2 + $0x172] sm:$0xff] }
 0x14b   : > { %v1683_v5 = vpop.f32.mrf.mxu0  ;;  %v3969_v30 = vpack.c.bf16 %v969_v39, %v968_v49 }
 0x14c   : > { %4322 = vst [vmem:[#allocation23_spill] sm:$0xff] %v3959_v2  ;;  %3191 = vmatmul.msk.bf16.gmra.mxu3 %vm278_vm1, %v3653_v57  ;;  %v1541_v2 = vld [vmem:[#allocation2 + $0x181] sm:$0xff] }
 0x14d   : > { %v1110_v38 = vpop.f32.mrf.mxu2  ;;  %v826_v35 = vpop.f32.mrf.mxu1 }
 0x14e   : > { %3208 = vmatmul.msk.bf16.gmra.mxu0 %vm278_vm1, %v3957_v47  ;;  %v1172_v15 = vadd.f32 %v1110_v38, %v886_v45  ;;  %v887_v29 = vadd.f32 %v826_v35, %v3788_v27  ;;  %v3977_v27 = vpack.c.bf16 %v1542_v56, %v1541_v2  ;;  %v2084_v2 = vld [vmem:[#allocation2 + $0x30] sm:$0xff] }
 0x14f   : > { %v1397_v11 = vpop.f32.mrf.mxu3 }
 0x150   : > { %v1459_v41 = vadd.f32 %v1397_v11, %v1172_v15 }
 0x152   : > { %v3966_v42 = vadd.f32 %v1683_v5, %v1459_v41  ;;  %v3973_v5 = vpack.c.bf16 %v1256_v4, %v1255_v8 }
 0x153   : > { %v1685_v28 = vpop.f32.mrf.mxu0 }
 0x155   : > { %v1112_v54 = vpop.f32.mrf.mxu2  ;;  %v829_v26 = vpop.f32.mrf.mxu1 }
 0x156   : > { %v1173_v57 = vadd.f32 %v1112_v54, %v887_v29  ;;  %v888_v15 = vadd.f32 %v829_v26, %v3800_v51 }
 0x157   : > { %v1399_v32 = vpop.f32.mrf.mxu3 }
 0x158   : > { %v1460_v45 = vadd.f32 %v1399_v32, %v1173_v57  ;;  %3158 = vmatmul.msk.bf16.gmra.mxu1 %vm278_vm1, %v3957_v47 }
 0x15a   : > { %3175 = vmatmul.msk.bf16.gmra.mxu2 %vm278_vm1, %v3969_v30  ;;  %v3979_v38 = vadd.f32 %v1685_v28, %v1460_v45  ;;  %v2085_v28 = vld [vmem:[#allocation2 + $0x38] sm:$0xff] }
 0x15b   : > { %v1688_v35 = vpop.f32.mrf.mxu0  ;;  %v2116_v57 = vpack.c.bf16 %v2085_v28, %v2084_v2 }
 0x15c   : > { %3192 = vmatmul.msk.bf16.gmra.mxu3 %vm278_vm1, %v3973_v5 }
 0x15d   : > { %v1115_v11 = vpop.f32.mrf.mxu2  ;;  %v831_v41 = vpop.f32.mrf.mxu1 }
 0x15e   : > { %3209 = vmatmul.msk.bf16.gmra.mxu0 %vm278_vm1, %v3977_v27  ;;  %v1174_v49 = vadd.f32 %v1115_v11, %v888_v15  ;;  %v889_v8 = vadd.f32 %v831_v41, %v3818_v63 }
 0x15f   : > { %v1402_v39 = vpop.f32.mrf.mxu3 }
 0x160   : > { %v1461_v29 = vadd.f32 %v1402_v39, %v1174_v49 }
 0x162   : > { %v3986_v54 = vadd.f32 %v1688_v35, %v1461_v29 }
 0x163   : > { %v1690_v56 = vpop.f32.mrf.mxu0 }
 0x165   : > { %v1117_v4 = vpop.f32.mrf.mxu2  ;;  %v834_v51 = vpop.f32.mrf.mxu1 }
 0x166   : > { %v1175_v26 = vadd.f32 %v1117_v4, %v889_v8  ;;  %v890_v11 = vadd.f32 %v834_v51, %v3726_v48 }
 0x167   : > { %v1404_v32 = vpop.f32.mrf.mxu3 }
 0x168   : > { %v1462_v45 = vadd.f32 %v1404_v32, %v1175_v26  ;;  %3211 = vmatmul.msk.bf16.vlgmr.msra.gmra.mxu1 %vm278_vm1, %v3672_v12 }
 0x16a   : > { %3228 = vmatmul.msk.bf16.vlgmr.msra.gmra.mxu2 %vm278_vm1, %v2116_v57  ;;  %v3992_v15 = vadd.f32 %v1690_v56, %v1462_v45 }
 0x16b   : > { %v1693_v35 = vpop.f32.mrf.mxu0 }
 0x16c   : > { %3245 = vmatmul.msk.bf16.vlgmr.msra.gmra.mxu3 %vm278_vm1, %v3677_v16 }
 0x16d   : > { %v1120_v63 = vpop.f32.mrf.mxu2  ;;  %v836_v41 = vpop.f32.mrf.mxu1 }
 0x16e   : > { %3262 = vmatmul.msk.bf16.vlgmr.msra.gmra.mxu0 %vm278_vm1, %v3684_v21  ;;  %v1176_v49 = vadd.f32 %v1120_v63, %v890_v11  ;;  %v891_v56 = vadd.f32 %v836_v41, %v3738_v60  ;;  %v2089_v41 = vld [vmem:[#allocation2 + $0x68] sm:$0xff] }
 0x16f   : > { %v1407_v39 = vpop.f32.mrf.mxu3 }
 0x170   : > { %v1463_v29 = vadd.f32 %v1407_v39, %v1176_v49 }
 0x172   : > { %v3999_v2 = vadd.f32 %v1693_v35, %v1463_v29 }
 0x173   : > { %v1695_v12 = vpop.f32.mrf.mxu0 }
 0x175   : > { %v1122_v28 = vpop.f32.mrf.mxu2  ;;  %v839_v8 = vpop.f32.mrf.mxu1 }
 0x176   : > { %v1177_v4 = vadd.f32 %v1122_v28, %v891_v56  ;;  %v892_v57 = vadd.f32 %v839_v8, %v3756_v3 }
 0x177   : > { %v1409_v48 = vpop.f32.mrf.mxu3 }
 0x178   : > { %v1464_v51 = vadd.f32 %v1409_v48, %v1177_v4  ;;  %3212 = vmatmul.msk.bf16.gmra.mxu1 %vm278_vm1, %v3684_v21 }
 0x17a   : > { %3229 = vmatmul.msk.bf16.gmra.mxu2 %vm278_vm1, %v3657_v58  ;;  %v4006_v16 = vadd.f32 %v1695_v12, %v1464_v51  ;;  %v2088_v58 = vld [vmem:[#allocation2 + $0x60] sm:$0xff] }
 0x17b   : > { %v1698_v26 = vpop.f32.mrf.mxu0  ;;  %v2118_v12 = vpack.c.bf16 %v2089_v41, %v2088_v58 }
 0x17c   : > { %3246 = vmatmul.msk.bf16.gmra.mxu3 %vm278_vm1, %v3690_v24 }
 0x17d   : > { %v1125_v60 = vpop.f32.mrf.mxu2  ;;  %v841_v32 = vpop.f32.mrf.mxu1 }
 0x17e   : > { %3263 = vmatmul.msk.bf16.gmra.mxu0 %vm278_vm1, %v3698_v31  ;;  %v1178_v45 = vadd.f32 %v1125_v60, %v892_v57  ;;  %v893_v49 = vadd.f32 %v841_v32, %v3768_v14  ;;  %v2090_v32 = vld [vmem:[#allocation2 + $0x78] sm:$0xff] }
 0x17f   : > { %v1412_v35 = vpop.f32.mrf.mxu3 }
 0x180   : > { %v1465_v11 = vadd.f32 %v1412_v35, %v1178_v45  ;;  %v2091_v45 = vld [vmem:[#allocation2 + $0x80] sm:$0xff] }
 0x181   : > { %v2119_v58 = vpack.c.bf16 %v2091_v45, %v2090_v32 }
 0x182   : > { %v4013_v21 = vadd.f32 %v1698_v26, %v1465_v11 }
 0x183   : > { %v1700_v63 = vpop.f32.mrf.mxu0 }
 0x185   : > { %v1127_v39 = vpop.f32.mrf.mxu2  ;;  %v844_v3 = vpop.f32.mrf.mxu1 }
 0x186   : > { %v1179_v29 = vadd.f32 %v1127_v39, %v893_v49  ;;  %v894_v4 = vadd.f32 %v844_v3, %v3786_v25 }
 0x187   : > { %v1414_v24 = vpop.f32.mrf.mxu3 }
 0x188   : > { %v1466_v56 = vadd.f32 %v1414_v24, %v1179_v29  ;;  %3213 = vmatmul.msk.bf16.gmra.mxu1 %vm278_vm1, %v3698_v31 }
 0x18a   : > { %3230 = vmatmul.msk.bf16.gmra.mxu2 %vm278_vm1, %v2118_v12  ;;  %v4019_v28 = vadd.f32 %v1700_v63, %v1466_v56 }
 0x18b   : > { %v1703_v8 = vpop.f32.mrf.mxu0 }
 0x18c   : > { %3247 = vmatmul.msk.bf16.gmra.mxu3 %vm278_vm1, %v3704_v36 }
 0x18d   : > { %v1130_v14 = vpop.f32.mrf.mxu2  ;;  %v846_v48 = vpop.f32.mrf.mxu1 }
 0x18e   : > { %3264 = vmatmul.msk.bf16.gmra.mxu0 %vm278_vm1, %v3714_v43  ;;  %v1180_v51 = vadd.f32 %v1130_v14, %v894_v4  ;;  %v895_v35 = vadd.f32 %v846_v48, %v3798_v40  ;;  %v2092_v4 = vld [vmem:[#allocation2 + $0x90] sm:$0xff]  ;;  %v2093_v14 = vld [vmem:[#allocation2 + $0x98] sm:$0xff] }
 0x18f   : > { %v1417_v26 = vpop.f32.mrf.mxu3 }
 0x190   : > { %v1467_v57 = vadd.f32 %v1417_v26, %v1180_v51 }
 0x192   : > { %v4026_v60 = vadd.f32 %v1703_v8, %v1467_v57  ;;  %v2120_v57 = vpack.c.bf16 %v2093_v14, %v2092_v4  ;;  %v4323_v14 = vld [vmem:[#allocation8_spill] sm:$0xff] }
 0x193   : > { %v1705_v31 = vpop.f32.mrf.mxu0 }
 0x195   : > { %v1132_v11 = vpop.f32.mrf.mxu2  ;;  %v849_v25 = vpop.f32.mrf.mxu1 }
 0x196   : > { %v1181_v63 = vadd.f32 %v1132_v11, %v895_v35  ;;  %v896_v3 = vadd.f32 %v849_v25, %v3816_v59 }
 0x197   : > { %v1419_v36 = vpop.f32.mrf.mxu3 }
 0x198   : > { %v1468_v41 = vadd.f32 %v1419_v36, %v1181_v63  ;;  %3214 = vmatmul.msk.bf16.gmra.mxu1 %vm278_vm1, %v3714_v43 }
 0x19a   : > { %3231 = vmatmul.msk.bf16.gmra.mxu2 %vm278_vm1, %v2119_v58  ;;  %v4032_v49 = vadd.f32 %v1705_v31, %v1468_v41  ;;  %v2094_v41 = vld [vmem:[#allocation2 + $0xa8] sm:$0xff] }
 0x19b   : > { %v1708_v39 = vpop.f32.mrf.mxu0 }
 0x19c   : > { %3248 = vmatmul.msk.bf16.gmra.mxu3 %vm278_vm1, %v3720_v33 }
 0x19d   : > { %v1135_v40 = vpop.f32.mrf.mxu2  ;;  %v851_v29 = vpop.f32.mrf.mxu1 }
 0x19e   : > { %3265 = vmatmul.msk.bf16.gmra.mxu0 %vm278_vm1, %v3742_v61  ;;  %v1182_v12 = vadd.f32 %v1135_v40, %v896_v3  ;;  %v897_v48 = vadd.f32 %v851_v29, %v3828_v20 }
 0x19f   : > { %v1422_v24 = vpop.f32.mrf.mxu3 }
 0x1a0   : > { %v1469_v56 = vadd.f32 %v1422_v24, %v1182_v12 }
 0x1a2   : > { %v4039_v8 = vadd.f32 %v1708_v39, %v1469_v56  ;;  %v2095_v39 = vld [vmem:[#allocation2 + $0xb0] sm:$0xff] }
 0x1a3   : > { %v1710_v43 = vpop.f32.mrf.mxu0  ;;  %v2121_v12 = vpack.c.bf16 %v2095_v39, %v2094_v41 }
 0x1a5   : > { %v1137_v51 = vpop.f32.mrf.mxu2  ;;  %v854_v59 = vpop.f32.mrf.mxu1 }
 0x1a6   : > { %v1183_v26 = vadd.f32 %v1137_v51, %v897_v48  ;;  %v898_v35 = vadd.f32 %v854_v59, %v3732_v50  ;;  %v4324_v51 = vld [vmem:[#allocation10_spill] sm:$0xff] }
 0x1a7   : > { %v1424_v33 = vpop.f32.mrf.mxu3 }
 0x1a8   : > { %v1470_v31 = vadd.f32 %v1424_v33, %v1183_v26  ;;  %3215 = vmatmul.msk.bf16.gmra.mxu1 %vm278_vm1, %v3742_v61 }
 0x1aa   : > { %3232 = vmatmul.msk.bf16.gmra.mxu2 %vm278_vm1, %v2120_v57  ;;  %v4045_v32 = vadd.f32 %v1710_v43, %v1470_v31  ;;  %v2096_v31 = vld [vmem:[#allocation2 + $0xc0] sm:$0xff] }
 0x1ab   : > { %v1713_v45 = vpop.f32.mrf.mxu0 }
 0x1ac   : > { %3249 = vmatmul.msk.bf16.gmra.mxu3 %vm278_vm1, %v3750_v1 }
 0x1ad   : > { %v1140_v20 = vpop.f32.mrf.mxu2  ;;  %v856_v11 = vpop.f32.mrf.mxu1 }
 0x1ae   : > { %3266 = vmatmul.msk.bf16.gmra.mxu0 %vm278_vm1, %v3772_v17  ;;  %v1184_v25 = vadd.f32 %v1140_v20, %v898_v35  ;;  %v899_v3 = vadd.f32 %v856_v11, %v3744_v62  ;;  %v4325_v35 = vld [vmem:[#allocation7_spill] sm:$0xff] }
 0x1af   : > { %v1427_v63 = vpop.f32.mrf.mxu3 }
 0x1b0   : > { %v1471_v58 = vadd.f32 %v1427_v63, %v1184_v25 }
 0x1b2   : > { %v4052_v36 = vadd.f32 %v1713_v45, %v1471_v58  ;;  %v2097_v45 = vld [vmem:[#allocation2 + $0xc8] sm:$0xff] }
 0x1b3   : > { %v1715_v61 = vpop.f32.mrf.mxu0  ;;  %v2122_v63 = vpack.c.bf16 %v2097_v45, %v2096_v31 }
 0x1b5   : > { %v1142_v40 = vpop.f32.mrf.mxu2  ;;  %v859_v50 = vpop.f32.mrf.mxu1 }
 0x1b6   : > { %v1185_v29 = vadd.f32 %v1142_v40, %v899_v3  ;;  %v900_v4 = vadd.f32 %v859_v50, %v3762_v6  ;;  %v4326_v3 = vld [vmem:[#allocation9_spill] sm:$0xff]  ;;  %v4327_v50 = vld [vmem:[#allocation12_spill] sm:$0xff] }
 0x1b7   : > { %v1429_v1 = vpop.f32.mrf.mxu3 }
 0x1b8   : > { %v1472_v24 = vadd.f32 %v1429_v1, %v1185_v29  ;;  %3216 = vmatmul.msk.bf16.gmra.mxu1 %vm278_vm1, %v3772_v17  ;;  %v4328_v1 = vld [vmem:[#allocation14_spill] sm:$0xff] }
 0x1ba   : > { %3233 = vmatmul.msk.bf16.gmra.mxu2 %vm278_vm1, %v2121_v12  ;;  %v4058_v56 = vadd.f32 %v1715_v61, %v1472_v24 }
 0x1bb   : > { %v1718_v43 = vpop.f32.mrf.mxu0 }
 0x1bc   : > { %3250 = vmatmul.msk.bf16.gmra.mxu3 %vm278_vm1, %v4323_v14 }
 0x1bd   : > { %v1145_v62 = vpop.f32.mrf.mxu2  ;;  %v861_v48 = vpop.f32.mrf.mxu1 }
 0x1be   : > { %3267 = vmatmul.msk.bf16.gmra.mxu0 %vm278_vm1, %v4324_v51  ;;  %v1186_v59 = vadd.f32 %v1145_v62, %v900_v4  ;;  %v901_v20 = vadd.f32 %v861_v48, %v4325_v35  ;;  %v2098_v48 = vld [vmem:[#allocation2 + $0xd8] sm:$0xff] }
 0x1bf   : > { %v1432_v26 = vpop.f32.mrf.mxu3 }
 0x1c0   : > { %v1473_v57 = vadd.f32 %v1432_v26, %v1186_v59  ;;  %v4329_v59 = vld [vmem:[#allocation11_spill] sm:$0xff] }
 0x1c2   : > { %v4065_v33 = vadd.f32 %v1718_v43, %v1473_v57 }
 0x1c3   : > { %v1720_v17 = vpop.f32.mrf.mxu0 }
 0x1c5   : > { %v1147_v11 = vpop.f32.mrf.mxu2  ;;  %v864_v6 = vpop.f32.mrf.mxu1 }
 0x1c6   : > { %v1187_v25 = vadd.f32 %v1147_v11, %v901_v20  ;;  %v902_v40 = vadd.f32 %v864_v6, %v4326_v3 }
 0x1c7   : > { %v1434_v58 = vpop.f32.mrf.mxu3 }
 0x1c8   : > { %v1474_v61 = vadd.f32 %v1434_v58, %v1187_v25  ;;  %3217 = vmatmul.msk.bf16.gmra.mxu1 %vm278_vm1, %v4324_v51  ;;  %v2099_v51 = vld [vmem:[#allocation2 + $0xe0] sm:$0xff] }
 0x1c9   : > { %v2123_v45 = vpack.c.bf16 %v2099_v51, %v2098_v48  ;;  %v4330_v25 = vld [vmem:[#allocation13_spill] sm:$0xff] }
 0x1ca   : > { %3234 = vmatmul.msk.bf16.gmra.mxu2 %vm278_vm1, %v2122_v63  ;;  %v4071_v41 = vadd.f32 %v1720_v17, %v1474_v61 }
 0x1cb   : > { %v1723_v39 = vpop.f32.mrf.mxu0 }
 0x1cc   : > { %3251 = vmatmul.msk.bf16.gmra.mxu3 %vm278_vm1, %v4327_v50 }
 0x1cd   : > { %v1150_v29 = vpop.f32.mrf.mxu2  ;;  %v866_v12 = vpop.f32.mrf.mxu1 }
 0x1ce   : > { %3268 = vmatmul.msk.bf16.gmra.mxu0 %vm278_vm1, %v4328_v1  ;;  %v1188_v24 = vadd.f32 %v1150_v29, %v902_v40  ;;  %v903_v26 = vadd.f32 %v866_v12, %v4329_v59  ;;  %v2100_v12 = vld [vmem:[#allocation2 + $0xf0] sm:$0xff] }
 0x1cf   : > { %v1437_v43 = vpop.f32.mrf.mxu3 }
 0x1d0   : > { %v1475_v4 = vadd.f32 %v1437_v43, %v1188_v24  ;;  %v4331_v24 = vld [vmem:[#allocation15_spill] sm:$0xff] }
 0x1d2   : > { %v4078_v14 = vadd.f32 %v1723_v39, %v1475_v4 }
 0x1d3   : > { %v1725_v62 = vpop.f32.mrf.mxu0 }
 0x1d5   : > { %v1152_v57 = vpop.f32.mrf.mxu2  ;;  %v869_v17 = vpop.f32.mrf.mxu1 }
 0x1d6   : > { %v1189_v31 = vadd.f32 %v1152_v57, %v903_v26  ;;  %v904_v63 = vadd.f32 %v869_v17, %v4330_v25 }
 0x1d7   : > { %v1439_v35 = vpop.f32.mrf.mxu3 }
 0x1d8   : > { %v1476_v20 = vadd.f32 %v1439_v35, %v1189_v31  ;;  %3218 = vmatmul.msk.bf16.gmra.mxu1 %vm278_vm1, %v4328_v1  ;;  %v2101_v1 = vld [vmem:[#allocation2 + $0xf8] sm:$0xff] }
 0x1da   : > { %3235 = vmatmul.msk.bf16.gmra.mxu2 %vm278_vm1, %v2123_v45  ;;  %v4084_v11 = vadd.f32 %v1725_v62, %v1476_v20 }
 0x1db   : > { %v1728_v6 = vpop.f32.mrf.mxu0 }
 0x1dc   : > { %3252 = vmatmul.msk.bf16.gmra.mxu3 %vm278_vm1, %v3839_v52  ;;  %v2124_v52 = vpack.c.bf16 %v2101_v1, %v2100_v12 }
 0x1dd   : > { %v1155_v58 = vpop.f32.mrf.mxu2  ;;  %v871_v61 = vpop.f32.mrf.mxu1 }
 0x1de   : > { %3269 = vmatmul.msk.bf16.gmra.mxu0 %vm278_vm1, %v3851_v22  ;;  %v1190_v39 = vadd.f32 %v1155_v58, %v904_v63  ;;  %v905_v43 = vadd.f32 %v871_v61, %v4331_v24  ;;  %v2102_v63 = vld [vmem:[#allocation2 + $0x108] sm:$0xff]  ;;  %v4332_v61 = vld [vmem:[#allocation16_spill] sm:$0xff] }
 0x1df   : > { %v1442_v3 = vpop.f32.mrf.mxu3 }
 0x1e0   : > { %v1477_v40 = vadd.f32 %v1442_v3, %v1190_v39 }
 0x1e2   : > { %v4091_v50 = vadd.f32 %v1728_v6, %v1477_v40  ;;  %v4110_v6 = vld [vmem:[%s4296_s2] ss:$0 sm:$0xff] }
 0x1e3   : > { %v1730_v29 = vpop.f32.mrf.mxu0 }
 0x1e5   : > { %v1157_v4 = vpop.f32.mrf.mxu2  ;;  %v1939_v62 = vpop.f32.mrf.mxu1 }
 0x1e6   : > { %v1191_v48 = vadd.f32 %v1157_v4, %v905_v43  ;;  %v2019_v17 = vadd.f32 %v1939_v62, %v3847_v53 }
 0x1e7   : > { %v1444_v51 = vpop.f32.mrf.mxu3 }
 0x1e8   : > { %v1478_v59 = vadd.f32 %v1444_v51, %v1191_v48  ;;  %3219 = vmatmul.msk.bf16.gmra.mxu1 %vm278_vm1, %v3851_v22 }
 0x1ea   : > { %3236 = vmatmul.msk.bf16.gmra.mxu2 %vm278_vm1, %v2124_v52  ;;  %v4097_v26 = vadd.f32 %v1730_v29, %v1478_v59 }
 0x1eb   : > { %v2798_v57 = vpop.f32.mrf.mxu0 }
 0x1ec   : > { %3253 = vmatmul.msk.bf16.gmra.mxu3 %vm278_vm1, %v3857_v0  ;;  %v2103_v0 = vld [vmem:[#allocation2 + $0x110] sm:$0xff] }
 0x1ed   : > { %v2226_v31 = vpop.f32.mrf.mxu2  ;;  %v1941_v45 = vpop.f32.mrf.mxu1  ;;  %v2125_v12 = vpack.c.bf16 %v2103_v0, %v2102_v63 }
 0x1ee   : > { %3270 = vmatmul.msk.bf16.gmra.mxu0 %vm278_vm1, %v3871_v44  ;;  %v2306_v35 = vadd.f32 %v2226_v31, %v2019_v17  ;;  %v2020_v39 = vadd.f32 %v1941_v45, %v4332_v61  ;;  %v2104_v45 = vld [vmem:[#allocation2 + $0x120] sm:$0xff] }
 0x1ef   : > { %v2512_v20 = vpop.f32.mrf.mxu3 }
 0x1f0   : > { %v2592_v22 = vadd.f32 %v2512_v20, %v2306_v35  ;;  %v2105_v35 = vld [vmem:[#allocation2 + $0x128] sm:$0xff] }
 0x1f1   : > { %v2126_v63 = vpack.c.bf16 %v2105_v35, %v2104_v45 }
 0x1f2   : > { %v2878_v53 = vadd.f32 %v2798_v57, %v2592_v22 }
 0x1f3   : > { %v2800_v25 = vpop.f32.mrf.mxu0 }
 0x1f4   : > { %v2978_v58 = vadd.f32 %v4110_v6, %v2878_v53 }
 0x1f5   : > { %v2228_v3 = vpop.f32.mrf.mxu2  ;;  %v1944_v40 = vpop.f32.mrf.mxu1 }
 0x1f6   : > { %3010 = vst [vmem:[%s4114_s6] sm:$0xff] %v2978_v58  ;;  %v2307_v29 = vadd.f32 %v2228_v3, %v2020_v39  ;;  %v2021_v48 = vadd.f32 %v1944_v40, %v3867_v46  ;;  %v4333_v46 = vld [vmem:[#allocation17_spill] sm:$0xff] }
 0x1f7   : > { %v2514_v1 = vpop.f32.mrf.mxu3 }
 0x1f8   : > { %v2593_v24 = vadd.f32 %v2514_v1, %v2307_v29  ;;  %3220 = vmatmul.msk.bf16.gmra.mxu1 %vm278_vm1, %v3871_v44 }
 0x1fa   : > { %v2879_v43 = vadd.f32 %v2800_v25, %v2593_v24  ;;  %3237 = vmatmul.msk.bf16.gmra.mxu2 %vm278_vm1, %v2125_v12 }
 0x1fb   : > { %v2803_v4 = vpop.f32.mrf.mxu0 }
 0x1fc   : > { %v2979_v62 = vadd.f32 %v4110_v6, %v2879_v43  ;;  %3254 = vmatmul.msk.bf16.gmra.mxu3 %vm278_vm1, %v3877_v37 }
 0x1fd   : > { %v2231_v52 = vpop.f32.mrf.mxu2  ;;  %v1946_v51 = vpop.f32.mrf.mxu1 }
 0x1fe   : > { %3011 = vst [vmem:[%s4114_s6 + $0x8] sm:$0xff] %v2979_v62  ;;  %3271 = vmatmul.msk.bf16.gmra.mxu0 %vm278_vm1, %v3891_v18  ;;  %v2308_v59 = vadd.f32 %v2231_v52, %v2021_v48  ;;  %v2022_v22 = vadd.f32 %v1946_v51, %v4333_v46  ;;  %v2106_v62 = vld [vmem:[#allocation2 + $0x138] sm:$0xff]  ;;  %v2107_v48 = vld [vmem:[#allocation2 + $0x140] sm:$0xff] }
 0x1ff   : > { %v2517_v44 = vpop.f32.mrf.mxu3 }
 0x200   : > { %v2594_v57 = vadd.f32 %v2517_v44, %v2308_v59 }
 0x202   : > { %v2880_v17 = vadd.f32 %v2803_v4, %v2594_v57  ;;  %v2127_v57 = vpack.c.bf16 %v2107_v48, %v2106_v62  ;;  %v4336_v62 = vld [vmem:[#allocation20_spill] sm:$0xff] }
 0x203   : > { %v2805_v31 = vpop.f32.mrf.mxu0 }
 0x204   : > { %v2980_v20 = vadd.f32 %v4110_v6, %v2880_v17 }
 0x205   : > { %v2233_v53 = vpop.f32.mrf.mxu2  ;;  %v1949_v37 = vpop.f32.mrf.mxu1 }
 0x206   : > { %3012 = vst [vmem:[%s4114_s6 + $0x10] sm:$0xff] %v2980_v20  ;;  %v2309_v25 = vadd.f32 %v2233_v53, %v2022_v22  ;;  %v2023_v40 = vadd.f32 %v1949_v37, %v3887_v55  ;;  %v4334_v55 = vld [vmem:[#allocation18_spill] sm:$0xff] }
 0x207   : > { %v2519_v0 = vpop.f32.mrf.mxu3 }
 0x208   : > { %v2595_v58 = vadd.f32 %v2519_v0, %v2309_v25  ;;  %3221 = vmatmul.msk.bf16.gmra.mxu1 %vm278_vm1, %v3891_v18 }
 0x20a   : > { %v2881_v61 = vadd.f32 %v2805_v31, %v2595_v58  ;;  %3238 = vmatmul.msk.bf16.gmra.mxu2 %vm278_vm1, %v2126_v63  ;;  %v2108_v58 = vld [vmem:[#allocation2 + $0x150] sm:$0xff] }
 0x20b   : > { %v2808_v39 = vpop.f32.mrf.mxu0 }
 0x20c   : > { %v2981_v3 = vadd.f32 %v4110_v6, %v2881_v61  ;;  %3255 = vmatmul.msk.bf16.gmra.mxu3 %vm278_vm1, %v3897_v34  ;;  %v2109_v61 = vld [vmem:[#allocation2 + $0x158] sm:$0xff] }
 0x20d   : > { %v2236_v29 = vpop.f32.mrf.mxu2  ;;  %v1951_v12 = vpop.f32.mrf.mxu1 }
 0x20e   : > { %3013 = vst [vmem:[%s4114_s6 + $0x18] sm:$0xff] %v2981_v3  ;;  %3272 = vmatmul.msk.bf16.gmra.mxu0 %vm278_vm1, %v3910_v7  ;;  %v2310_v1 = vadd.f32 %v2236_v29, %v2023_v40  ;;  %v2024_v51 = vadd.f32 %v1951_v12, %v4334_v55  ;;  %v2128_v12 = vpack.c.bf16 %v2109_v61, %v2108_v58 }
 0x20f   : > { %v2522_v18 = vpop.f32.mrf.mxu3 }
 0x210   : > { %v2596_v24 = vadd.f32 %v2522_v18, %v2310_v1 }
 0x212   : > { %v2882_v43 = vadd.f32 %v2808_v39, %v2596_v24 }
 0x213   : > { %v2810_v4 = vpop.f32.mrf.mxu0 }
 0x214   : > { %v2982_v52 = vadd.f32 %v4110_v6, %v2882_v43 }
 0x215   : > { %v2238_v59 = vpop.f32.mrf.mxu2  ;;  %v1954_v34 = vpop.f32.mrf.mxu1 }
 0x216   : > { %3014 = vst [vmem:[%s4114_s6 + $0x20] sm:$0xff] %v2982_v52  ;;  %v2311_v44 = vadd.f32 %v2238_v59, %v2024_v51  ;;  %v2025_v46 = vadd.f32 %v1954_v34, %v3907_v9  ;;  %v4335_v9 = vld [vmem:[#allocation19_spill] sm:$0xff] }
 0x217   : > { %v2524_v17 = vpop.f32.mrf.mxu3  ;;  %v223_v34 = vld [vmem:[%s3533_s11 + $0xd4] sm:$0x1] }
 0x218   : > { %v2597_v31 = vadd.f32 %v2524_v17, %v2311_v44  ;;  %3222 = vmatmul.msk.bf16.gmra.mxu1 %vm278_vm1, %v3910_v7 }
 0x21a   : > { %v2883_v45 = vadd.f32 %v2810_v4, %v2597_v31  ;;  %3239 = vmatmul.msk.bf16.gmra.mxu2 %vm278_vm1, %v2127_v57  ;;  %v277_v31 = vunpack.c.l.bf16 %v223_v34 }
 0x21b   : > { %v2813_v35 = vpop.f32.mrf.mxu0 }
 0x21c   : > { %v2983_v20 = vadd.f32 %v4110_v6, %v2883_v45  ;;  %3256 = vmatmul.msk.bf16.gmra.mxu3 %vm278_vm1, %v3916_v19  ;;  %333 = vst.msk [vmem:[#allocation2 + $0x1a8] sm:$0x3] %vm281_vm2, %v277_v31 }
 0x21d   : > { %v2241_v22 = vpop.f32.mrf.mxu2  ;;  %v1956_v53 = vpop.f32.mrf.mxu1 }
 0x21e   : > { %3015 = vst [vmem:[%s4114_s6 + $0x28] sm:$0xff] %v2983_v20  ;;  %3273 = vmatmul.msk.bf16.gmra.mxu0 %vm278_vm1, %v3933_v13  ;;  %v2312_v37 = vadd.f32 %v2241_v22, %v2025_v46  ;;  %v2026_v3 = vadd.f32 %v1956_v53, %v4335_v9  ;;  %v2111_v20 = vld [vmem:[#allocation2 + $0x170] sm:$0xff]  ;;  %v4337_v22 = vld [vmem:[#allocation21_spill] sm:$0xff] }
 0x21f   : > { %v2527_v7 = vpop.f32.mrf.mxu3 }
 0x220   : > { %v2598_v25 = vadd.f32 %v2527_v7, %v2312_v37 }
 0x222   : > { %v2884_v63 = vadd.f32 %v2813_v35, %v2598_v25 }
 0x223   : > { %v2815_v0 = vpop.f32.mrf.mxu0 }
 0x224   : > { %v2984_v39 = vadd.f32 %v4110_v6, %v2884_v63 }
 0x225   : > { %v2243_v40 = vpop.f32.mrf.mxu2  ;;  %v1959_v19 = vpop.f32.mrf.mxu1 }
 0x226   : > { %3016 = vst [vmem:[%s4114_s6 + $0x30] sm:$0xff] %v2984_v39  ;;  %v2313_v29 = vadd.f32 %v2243_v40, %v2026_v3  ;;  %v2027_v48 = vadd.f32 %v1959_v19, %v4336_v62  ;;  %v4338_v3 = vld [vmem:[#allocation22_spill] sm:$0xff] }
 0x227   : > { %v2529_v1 = vpop.f32.mrf.mxu3 }
 0x228   : > { %v2599_v18 = vadd.f32 %v2529_v1, %v2313_v29  ;;  %3223 = vmatmul.msk.bf16.gmra.mxu1 %vm278_vm1, %v3933_v13  ;;  %v221_v13 = vld [vmem:[%s3533_s11 + $0xcc] sm:$0xff]   ;;  %s3055_s11 = sshll.u32 %s4114_s6, 4  ;;  %s3056_s11 = int_to_ptr.vmem [resolvable:$true] %s3055_s11 }
 0x229   : > { %v275_v57 = vunpack.c.l.bf16 %v221_v13  ;;  %v276_v17 = vunpack.c.h.bf16 %v221_v13 }
 0x22a   : > { %v2885_v24 = vadd.f32 %v2815_v0, %v2599_v18  ;;  %3240 = vmatmul.msk.bf16.gmra.mxu2 %vm278_vm1, %v2128_v12 }
 0x22b   : > { %v2818_v43 = vpop.f32.mrf.mxu0  ;;  %331 = vst.msk [vmem:[#allocation2 + $0x198] sm:$0xff] %vm278_vm1, %v275_v57 }
 0x22c   : > { %v2985_v4 = vadd.f32 %v4110_v6, %v2885_v24  ;;  %3257 = vmatmul.msk.bf16.gmra.mxu3 %vm278_vm1, %v3939_v10  ;;  %v2110_v10 = vld [vmem:[#allocation2 + $0x168] sm:$0xff]  ;;  %332 = vst.msk [vmem:[#allocation2 + $0x1a0] sm:$0xff] %vm278_vm1, %v276_v17 }
 0x22d   : > { %v2246_v52 = vpop.f32.mrf.mxu2  ;;  %v1961_v55 = vpop.f32.mrf.mxu1  ;;  %v2129_v63 = vpack.c.bf16 %v2111_v20, %v2110_v10 }
 0x22e   : > { %3017 = vst [vmem:[%s4114_s6 + $0x38] sm:$0xff] %v2985_v4  ;;  %3274 = vmatmul.msk.bf16.gmra.mxu0 %vm278_vm1, %v3951_v23  ;;  %v2314_v51 = vadd.f32 %v2246_v52, %v2027_v48  ;;  %v2028_v53 = vadd.f32 %v1961_v55, %v4337_v22  ;;  %v4339_v4 = vld [vmem:[#allocation23_spill] sm:$0xff] }
 0x22f   : > { %v2532_v59 = vpop.f32.mrf.mxu3 }
 0x230   : > { %v2600_v44 = vadd.f32 %v2532_v59, %v2314_v51  ;;  %v2684_v51 = vld [vmem:[#allocation2 + $0x182] sm:$0xff]  ;;  %v2685_v59 = vld [vmem:[#allocation2 + $0x18a] sm:$0xff] }
 0x232   : > { %v2886_v45 = vadd.f32 %v2818_v43, %v2600_v44  ;;  %v2702_v44 = vpack.c.bf16 %v2685_v59, %v2684_v51  ;;  %v2114_v22 = vld [vmem:[#allocation2 + $0x198] sm:$0xff] }
 0x233   : > { %v2820_v35 = vpop.f32.mrf.mxu0 }
 0x234   : > { %v2986_v46 = vadd.f32 %v4110_v6, %v2886_v45 }
 0x235   : > { %v2248_v37 = vpop.f32.mrf.mxu2  ;;  %v1964_v7 = vpop.f32.mrf.mxu1 }
 0x236   : > { %3018 = vst [vmem:[%s4114_s6 + $0x40] sm:$0xff] %v2986_v46  ;;  %v2315_v25 = vadd.f32 %v2248_v37, %v2028_v53  ;;  %v2029_v40 = vadd.f32 %v1964_v7, %v4338_v3  ;;  %v2115_v53 = vld [vmem:[#allocation2 + $0x1a0] sm:$0xff] }
 0x237   : > { %v2534_v0 = vpop.f32.mrf.mxu3 }
 0x238   : > { %v2601_v58 = vadd.f32 %v2534_v0, %v2315_v25  ;;  %3224 = vmatmul.msk.bf16.gmra.mxu1 %vm278_vm1, %v3951_v23 }
 0x23a   : > { %v2887_v61 = vadd.f32 %v2820_v35, %v2601_v58  ;;  %3241 = vmatmul.msk.bf16.gmra.mxu2 %vm278_vm1, %v2129_v63  ;;  %v2401_v63 = vld [vmem:[#allocation2 + $0x1a1] sm:$0xff]  ;;  %v2131_v58 = vpack.c.bf16 %v2115_v53, %v2114_v22 }
 0x23b   : > { %v2823_v39 = vpop.f32.mrf.mxu0 }
 0x23c   : > { %v2987_v9 = vadd.f32 %v4110_v6, %v2887_v61  ;;  %3258 = vmatmul.msk.bf16.gmra.mxu3 %vm278_vm1, %v3957_v47 }
 0x23d   : > { %v2251_v19 = vpop.f32.mrf.mxu2  ;;  %v1966_v29 = vpop.f32.mrf.mxu1 }
 0x23e   : > { %3019 = vst [vmem:[%s4114_s6 + $0x48] sm:$0xff] %v2987_v9  ;;  %3275 = vmatmul.msk.bf16.gmra.mxu0 %vm278_vm1, %v3969_v30  ;;  %v2316_v12 = vadd.f32 %v2251_v19, %v2029_v40  ;;  %v2030_v62 = vadd.f32 %v1966_v29, %v4339_v4  ;;  %v2687_v9 = vld [vmem:[#allocation2 + $0x1a2] sm:$0xff] }
 0x23f   : > { %v2537_v23 = vpop.f32.mrf.mxu3 }
 0x240   : > { %v2602_v1 = vadd.f32 %v2537_v23, %v2316_v12 }
 0x242   : > { %v2888_v18 = vadd.f32 %v2823_v39, %v2602_v1  ;;  %v2686_v39 = vld [vmem:[#allocation2 + $0x19a] sm:$0xff] }
 0x243   : > { %v2825_v24 = vpop.f32.mrf.mxu0  ;;  %v2703_v29 = vpack.c.bf16 %v2687_v9, %v2686_v39 }
 0x244   : > { %v2988_v43 = vadd.f32 %v4110_v6, %v2888_v18 }
 0x245   : > { %v2253_v48 = vpop.f32.mrf.mxu2  ;;  %v1969_v52 = vpop.f32.mrf.mxu1 }
 0x246   : > { %3020 = vst [vmem:[%s4114_s6 + $0x50] sm:$0xff] %v2988_v43  ;;  %v2317_v47 = vadd.f32 %v2253_v48, %v2030_v62  ;;  %v2031_v31 = vadd.f32 %v1969_v52, %v3966_v42 }
 0x247   : > { %v2539_v55 = vpop.f32.mrf.mxu3 }
 0x248   : > { %v2603_v13 = vadd.f32 %v2539_v55, %v2317_v47  ;;  %3225 = vmatmul.msk.bf16.gmra.mxu1 %vm278_vm1, %v3969_v30 }
 0x24a   : > { %v2889_v34 = vadd.f32 %v2825_v24, %v2603_v13  ;;  %3242 = vmatmul.msk.bf16.gmra.mxu2 %vm278_vm1, %v3973_v5 }
 0x24b   : > { %v2828_v57 = vpop.f32.mrf.mxu0 }
 0x24c   : > { %v2989_v17 = vadd.f32 %v4110_v6, %v2889_v34  ;;  %3259 = vmatmul.msk.bf16.gmra.mxu3 %vm278_vm1, %v3977_v27  ;;  %v2400_v27 = vld [vmem:[#allocation2 + $0x199] sm:$0xff] }
 0x24d   : > { %v2256_v45 = vpop.f32.mrf.mxu2  ;;  %v1971_v35 = vpop.f32.mrf.mxu1  ;;  %v2417_v40 = vpack.c.bf16 %v2401_v63, %v2400_v27 }
 0x24e   : > { %3021 = vst [vmem:[%s4114_s6 + $0x58] sm:$0xff] %v2989_v17  ;;  %3276 = vmatmul.msk.bf16.gmra.mxu0 %vm278_vm1, %v2702_v44  ;;  %v2318_v30 = vadd.f32 %v2256_v45, %v2031_v31  ;;  %v2032_v42 = vadd.f32 %v1971_v35, %v3979_v38 }
 0x24f   : > { %v2542_v10 = vpop.f32.mrf.mxu3 }
 0x250   : > { %v2604_v20 = vadd.f32 %v2542_v10, %v2318_v30 }
 0x252   : > { %v2890_v46 = vadd.f32 %v2828_v57, %v2604_v20 }
 0x253   : > { %v2830_v5 = vpop.f32.mrf.mxu0 }
 0x254   : > { %v2990_v37 = vadd.f32 %v4110_v6, %v2890_v46 }
 0x255   : > { %v2258_v7 = vpop.f32.mrf.mxu2  ;;  %v1974_v25 = vpop.f32.mrf.mxu1 }
 0x256   : > { %3022 = vst [vmem:[%s4114_s6 + $0x60] sm:$0xff] %v2990_v37  ;;  %v2319_v0 = vadd.f32 %v2258_v7, %v2032_v42  ;;  %v2033_v23 = vadd.f32 %v1974_v25, %v3986_v54 }
 0x257   : > { %v2544_v61 = vpop.f32.mrf.mxu3 }
 0x258   : > { %v2605_v3 = vadd.f32 %v2544_v61, %v2319_v0  ;;  %3226 = vmatmul.msk.bf16.gmra.mxu1 %vm278_vm1, %v2702_v44 }
 0x25a   : > { %v2891_v19 = vadd.f32 %v2830_v5, %v2605_v3  ;;  %3243 = vmatmul.msk.bf16.gmra.mxu2 %vm278_vm1, %v2131_v58 }
 0x25b   : > { %v2833_v38 = vpop.f32.mrf.mxu0 }
 0x25c   : > { %v2991_v12 = vadd.f32 %v4110_v6, %v2891_v19  ;;  %3260 = vmatmul.msk.bf16.gmra.mxu3 %vm278_vm1, %v2417_v40 }
 0x25d   : > { %v2261_v1 = vpop.f32.mrf.mxu2  ;;  %v1976_v18 = vpop.f32.mrf.mxu1 }
 0x25e   : > { %3023 = vst [vmem:[%s4114_s6 + $0x68] sm:$0xff] %v2991_v12  ;;  %3277 = vmatmul.msk.bf16.gmra.mxu0 %vm278_vm1, %v2703_v29  ;;  %v2320_v24 = vadd.f32 %v2261_v1, %v2033_v23  ;;  %v2034_v47 = vadd.f32 %v1976_v18, %v3992_v15 }
 0x25f   : > { %v2547_v43 = vpop.f32.mrf.mxu3 }
 0x260   : > { %v2606_v4 = vadd.f32 %v2547_v43, %v2320_v24 }
 0x262   : > { %v2892_v62 = vadd.f32 %v2833_v38, %v2606_v4 }
 0x263   : > { %v2835_v48 = vpop.f32.mrf.mxu0 }
 0x264   : > { %v2992_v52 = vadd.f32 %v4110_v6, %v2892_v62 }
 0x265   : > { %v2263_v55 = vpop.f32.mrf.mxu2  ;;  %v1979_v51 = vpop.f32.mrf.mxu1 }
 0x266   : > { %3024 = vst [vmem:[%s4114_s6 + $0x70] sm:$0xff] %v2992_v52  ;;  %v2321_v54 = vadd.f32 %v2263_v55, %v2034_v47  ;;  %v2035_v17 = vadd.f32 %v1979_v51, %v3999_v2 }
 0x267   : > { %v2549_v59 = vpop.f32.mrf.mxu3 }
 0x268   : > { %v2607_v13 = vadd.f32 %v2549_v59, %v2321_v54 }
 0x26a   : > { %v2893_v34 = vadd.f32 %v2835_v48, %v2607_v13 }
 0x26b   : > { %v2838_v44 = vpop.f32.mrf.mxu0 }
 0x26c   : > { %v2993_v57 = vadd.f32 %v4110_v6, %v2893_v34 }
 0x26d   : > { %v2266_v31 = vpop.f32.mrf.mxu2  ;;  %v1981_v45 = vpop.f32.mrf.mxu1 }
 0x26e   : > { %3025 = vst [vmem:[%s4114_s6 + $0x78] sm:$0xff] %v2993_v57  ;;  %v2322_v35 = vadd.f32 %v2266_v31, %v2035_v17  ;;  %v2036_v5 = vadd.f32 %v1981_v45, %v4006_v16 }
 0x26f   : > { %v2552_v30 = vpop.f32.mrf.mxu3 }
 0x270   : > { %v2608_v10 = vadd.f32 %v2552_v30, %v2322_v35 }
 0x272   : > { %v2894_v15 = vadd.f32 %v2838_v44, %v2608_v10 }
 0x273   : > { %v2840_v20 = vpop.f32.mrf.mxu0 }
 0x274   : > { %v2994_v46 = vadd.f32 %v4110_v6, %v2894_v15 }
 0x275   : > { %v2268_v22 = vpop.f32.mrf.mxu2  ;;  %v1984_v53 = vpop.f32.mrf.mxu1 }
 0x276   : > { %3026 = vst [vmem:[%s4114_s6 + $0x80] sm:$0xff] %v2994_v46  ;;  %v2323_v37 = vadd.f32 %v2268_v22, %v2036_v5  ;;  %v2037_v63 = vadd.f32 %v1984_v53, %v4013_v21 }
 0x277   : > { %v2554_v42 = vpop.f32.mrf.mxu3 }
 0x278   : > { %v2609_v7 = vadd.f32 %v2554_v42, %v2323_v37 }
 0x27a   : > { %v2895_v2 = vadd.f32 %v2840_v20, %v2609_v7 }
 0x27b   : > { %v2843_v25 = vpop.f32.mrf.mxu0 }
 0x27c   : > { %v2995_v27 = vadd.f32 %v4110_v6, %v2895_v2 }
 0x27d   : > { %v2271_v0 = vpop.f32.mrf.mxu2  ;;  %v1986_v58 = vpop.f32.mrf.mxu1 }
 0x27e   : > { %3027 = vst [vmem:[%s4114_s6 + $0x88] sm:$0xff] %v2995_v27  ;;  %v2324_v61 = vadd.f32 %v2271_v0, %v2037_v63  ;;  %v2038_v19 = vadd.f32 %v1986_v58, %v4019_v28 }
 0x27f   : > { %v2557_v39 = vpop.f32.mrf.mxu3 }
 0x280   : > { %v2610_v9 = vadd.f32 %v2557_v39, %v2324_v61 }
 0x282   : > { %v2896_v16 = vadd.f32 %v2843_v25, %v2610_v9 }
 0x283   : > { %v2845_v3 = vpop.f32.mrf.mxu0 }
 0x284   : > { %v2996_v40 = vadd.f32 %v4110_v6, %v2896_v16 }
 0x285   : > { %v2273_v29 = vpop.f32.mrf.mxu2  ;;  %v1989_v38 = vpop.f32.mrf.mxu1 }
 0x286   : > { %3028 = vst [vmem:[%s4114_s6 + $0x90] sm:$0xff] %v2996_v40  ;;  %v2325_v12 = vadd.f32 %v2273_v29, %v2038_v19  ;;  %v2039_v43 = vadd.f32 %v1989_v38, %v4026_v60 }
 0x287   : > { %v2559_v23 = vpop.f32.mrf.mxu3 }
 0x288   : > { %v2611_v1 = vadd.f32 %v2559_v23, %v2325_v12 }
 0x28a   : > { %v2897_v21 = vadd.f32 %v2845_v3, %v2611_v1 }
 0x28b   : > { %v2848_v18 = vpop.f32.mrf.mxu0 }
 0x28c   : > { %v2997_v24 = vadd.f32 %v4110_v6, %v2897_v21 }
 0x28d   : > { %v2276_v4 = vpop.f32.mrf.mxu2  ;;  %v1991_v62 = vpop.f32.mrf.mxu1 }
 0x28e   : > { %3029 = vst [vmem:[%s4114_s6 + $0x98] sm:$0xff] %v2997_v24  ;;  %v2326_v48 = vadd.f32 %v2276_v4, %v2039_v43  ;;  %v2040_v54 = vadd.f32 %v1991_v62, %v4032_v49 }
 0x28f   : > { %v2562_v52 = vpop.f32.mrf.mxu3 }
 0x290   : > { %v2612_v47 = vadd.f32 %v2562_v52, %v2326_v48 }
 0x292   : > { %v2898_v28 = vadd.f32 %v2848_v18, %v2612_v47 }
 0x293   : > { %v2850_v55 = vpop.f32.mrf.mxu0 }
 0x294   : > { %v2998_v51 = vadd.f32 %v4110_v6, %v2898_v28 }
 0x295   : > { %v2278_v59 = vpop.f32.mrf.mxu2  ;;  %v1994_v13 = vpop.f32.mrf.mxu1 }
 0x296   : > { %3030 = vst [vmem:[%s4114_s6 + $0xa0] sm:$0xff] %v2998_v51  ;;  %v2327_v34 = vadd.f32 %v2278_v59, %v2040_v54  ;;  %v2041_v45 = vadd.f32 %v1994_v13, %v4039_v8 }
 0x297   : > { %v2564_v44 = vpop.f32.mrf.mxu3 }
 0x298   : > { %v2613_v57 = vadd.f32 %v2564_v44, %v2327_v34 }
 0x29a   : > { %v2899_v60 = vadd.f32 %v2850_v55, %v2613_v57 }
 0x29b   : > { %v2853_v17 = vpop.f32.mrf.mxu0 }
 0x29c   : > { %v2999_v31 = vadd.f32 %v4110_v6, %v2899_v60 }
 0x29d   : > { %v2281_v35 = vpop.f32.mrf.mxu2  ;;  %v1996_v30 = vpop.f32.mrf.mxu1 }
 0x29e   : > { %3031 = vst [vmem:[%s4114_s6 + $0xa8] sm:$0xff] %v2999_v31  ;;  %v2328_v10 = vadd.f32 %v2281_v35, %v2041_v45  ;;  %v2042_v22 = vadd.f32 %v1996_v30, %v4045_v32 }
 0x29f   : > { %v2567_v15 = vpop.f32.mrf.mxu3 }
 0x2a0   : > { %v2614_v20 = vadd.f32 %v2567_v15, %v2328_v10 }
 0x2a2   : > { %v2900_v49 = vadd.f32 %v2853_v17, %v2614_v20 }
 0x2a3   : > { %v2855_v46 = vpop.f32.mrf.mxu0 }
 0x2a4   : > { %v3000_v5 = vadd.f32 %v4110_v6, %v2900_v49 }
 0x2a5   : > { %v2283_v53 = vpop.f32.mrf.mxu2  ;;  %v1999_v37 = vpop.f32.mrf.mxu1 }
 0x2a6   : > { %3032 = vst [vmem:[%s4114_s6 + $0xb0] sm:$0xff] %v3000_v5  ;;  %v2329_v42 = vadd.f32 %v2283_v53, %v2042_v22  ;;  %v2043_v63 = vadd.f32 %v1999_v37, %v4052_v36 }
 0x2a7   : > { %v2569_v7 = vpop.f32.mrf.mxu3 }
 0x2a8   : > { %v2615_v2 = vadd.f32 %v2569_v7, %v2329_v42 }
 0x2aa   : > { %v2901_v8 = vadd.f32 %v2855_v46, %v2615_v2 }
 0x2ab   : > { %v2858_v25 = vpop.f32.mrf.mxu0 }
 0x2ac   : > { %v3001_v27 = vadd.f32 %v4110_v6, %v2901_v8 }
 0x2ad   : > { %v2286_v0 = vpop.f32.mrf.mxu2  ;;  %v2001_v58 = vpop.f32.mrf.mxu1 }
 0x2ae   : > { %3033 = vst [vmem:[%s4114_s6 + $0xb8] sm:$0xff] %v3001_v27  ;;  %v2330_v61 = vadd.f32 %v2286_v0, %v2043_v63  ;;  %v2044_v40 = vadd.f32 %v2001_v58, %v4058_v56 }
 0x2af   : > { %v2572_v39 = vpop.f32.mrf.mxu3 }
 0x2b0   : > { %v2616_v9 = vadd.f32 %v2572_v39, %v2330_v61 }
 0x2b2   : > { %v2902_v32 = vadd.f32 %v2858_v25, %v2616_v9 }
 0x2b3   : > { %v2860_v16 = vpop.f32.mrf.mxu0 }
 0x2b4   : > { %v3002_v3 = vadd.f32 %v4110_v6, %v2902_v32 }
 0x2b5   : > { %v2288_v19 = vpop.f32.mrf.mxu2  ;;  %v2004_v29 = vpop.f32.mrf.mxu1 }
 0x2b6   : > { %3034 = vst [vmem:[%s4114_s6 + $0xc0] sm:$0xff] %v3002_v3  ;;  %v2331_v38 = vadd.f32 %v2288_v19, %v2044_v40  ;;  %v2045_v18 = vadd.f32 %v2004_v29, %v4065_v33 }
 0x2b7   : > { %v2574_v12 = vpop.f32.mrf.mxu3 }
 0x2b8   : > { %v2617_v23 = vadd.f32 %v2574_v12, %v2331_v38 }
 0x2ba   : > { %v2903_v36 = vadd.f32 %v2860_v16, %v2617_v23 }
 0x2bb   : > { %v2863_v1 = vpop.f32.mrf.mxu0 }
 0x2bc   : > { %v3003_v21 = vadd.f32 %v4110_v6, %v2903_v36 }
 0x2bd   : > { %v2291_v24 = vpop.f32.mrf.mxu2  ;;  %v2006_v43 = vpop.f32.mrf.mxu1 }
 0x2be   : > { %3035 = vst [vmem:[%s4114_s6 + $0xc8] sm:$0xff] %v3003_v21  ;;  %v2332_v4 = vadd.f32 %v2291_v24, %v2045_v18  ;;  %v2046_v28 = vadd.f32 %v2006_v43, %v4071_v41 }
 0x2bf   : > { %v2577_v62 = vpop.f32.mrf.mxu3 }
 0x2c0   : > { %v2618_v48 = vadd.f32 %v2577_v62, %v2332_v4 }
 0x2c2   : > { %v2904_v56 = vadd.f32 %v2863_v1, %v2618_v48 }
 0x2c3   : > { %v2865_v52 = vpop.f32.mrf.mxu0 }
 0x2c4   : > { %v3004_v47 = vadd.f32 %v4110_v6, %v2904_v56 }
 0x2c5   : > { %v2293_v55 = vpop.f32.mrf.mxu2  ;;  %v2009_v51 = vpop.f32.mrf.mxu1 }
 0x2c6   : > { %3036 = vst [vmem:[%s4114_s6 + $0xd0] sm:$0xff] %v3004_v47  ;;  %v2333_v54 = vadd.f32 %v2293_v55, %v2046_v28  ;;  %v2047_v57 = vadd.f32 %v2009_v51, %v4078_v14 }
 0x2c7   : > { %v2579_v59 = vpop.f32.mrf.mxu3 }
 0x2c8   : > { %v2619_v13 = vadd.f32 %v2579_v59, %v2333_v54 }
 0x2ca   : > { %v2905_v33 = vadd.f32 %v2865_v52, %v2619_v13 }
 0x2cb   : > { %v2868_v34 = vpop.f32.mrf.mxu0 }
 0x2cc   : > { %v3005_v44 = vadd.f32 %v4110_v6, %v2905_v33 }
 0x2cd   : > { %v2296_v60 = vpop.f32.mrf.mxu2  ;;  %v2011_v17 = vpop.f32.mrf.mxu1 }
 0x2ce   : > { %3037 = vst [vmem:[%s4114_s6 + $0xd8] sm:$0xff] %v3005_v44  ;;  %v2334_v31 = vadd.f32 %v2296_v60, %v2047_v57  ;;  %v2048_v10 = vadd.f32 %v2011_v17, %v4084_v11 }
 0x2cf   : > { %v2582_v45 = vpop.f32.mrf.mxu3 }
 0x2d0   : > { %v2620_v41 = vadd.f32 %v2582_v45, %v2334_v31 }
 0x2d2   : > { %v2906_v35 = vadd.f32 %v2868_v34, %v2620_v41 }
 0x2d3   : > { %v2870_v15 = vpop.f32.mrf.mxu0 }
 0x2d4   : > { %v3006_v30 = vadd.f32 %v4110_v6, %v2906_v35 }
 0x2d5   : > { %v2298_v20 = vpop.f32.mrf.mxu2  ;;  %v2014_v5 = vpop.f32.mrf.mxu1 }
 0x2d6   : > { %3038 = vst [vmem:[%s4114_s6 + $0xe0] sm:$0xff] %v3006_v30  ;;  %v2335_v49 = vadd.f32 %v2298_v20, %v2048_v10  ;;  %v2049_v37 = vadd.f32 %v2014_v5, %v4091_v50 }
 0x2d7   : > { %v2584_v46 = vpop.f32.mrf.mxu3 }
 0x2d8   : > { %v2621_v14 = vadd.f32 %v2584_v46, %v2335_v49 }
 0x2da   : > { %v2907_v22 = vadd.f32 %v2870_v15, %v2621_v14 }
 0x2db   : > { %v2873_v2 = vpop.f32.mrf.mxu0 }
 0x2dc   : > { %v3007_v53 = vadd.f32 %v4110_v6, %v2907_v22 }
 0x2dd   : > { %v2301_v42 = vpop.f32.mrf.mxu2  ;;  %v2016_v25 = vpop.f32.mrf.mxu1 }
 0x2de   : > { %3039 = vst [vmem:[%s4114_s6 + $0xe8] sm:$0xff] %v3007_v53  ;;  %v2336_v7 = vadd.f32 %v2301_v42, %v2049_v37  ;;  %v2050_v0 = vadd.f32 %v2016_v25, %v4097_v26 }
 0x2df   : > { %v2587_v11 = vpop.f32.mrf.mxu3 }
 0x2e0   : > { %v2622_v8 = vadd.f32 %v2587_v11, %v2336_v7 }
 0x2e2   : > { %v2908_v27 = vadd.f32 %v2873_v2, %v2622_v8 }
 0x2e3   : > { %v2875_v9 = vpop.f32.mrf.mxu0 }
 0x2e4   : > { %v3008_v63 = vadd.f32 %v4110_v6, %v2908_v27 }
 0x2e5   : > { %v2303_v58 = vpop.f32.mrf.mxu2 }
 0x2e6   : > { %3040 = vst [vmem:[%s4114_s6 + $0xf0] sm:$0xff] %v3008_v63  ;;  %v2337_v50 = vadd.f32 %v2303_v58, %v2050_v0 }
 0x2e7   : > { %v2589_v61 = vpop.f32.mrf.mxu3 }
 0x2e8   : > { %v2623_v39 = vadd.f32 %v2589_v61, %v2337_v50 }
 0x2ea   : > { %v2909_v32 = vadd.f32 %v2875_v9, %v2623_v39 }
 0x2ec   : > { %v3009_v16 = vadd.f32 %v4110_v6, %v2909_v32 }
 0x2ee   : > { %3041 = vst [vmem:[%s4114_s6 + $0xf8] sm:$0xff] %v3009_v16 }
 0x2ef   : > { %3401 = shalt.err (!%p3398_p3)
}
 0x2f0   : > { %s3438_s29 = smov 128   ;;  %s3439_s30 = smov 8  }
 0x2f1   : > { %3332 = dma.vmem_to_hbm [thread:$0]  (%p3498_p5), %s3056_s11, 4096, %s3058_s17, %s3043_s16, %s3438_s29, %s3438_s29, %s3439_s30  }
 0x2f2 PF: > { %p3338_p4 = scmp.ge.s32.totalorder %s3436_s15, 2  ;;  %s3072_s4 = sand.u32 1, %s3424_s12  }
 0x2f3   : > { %s3073_s5 = scalar_lea.sflag [#allocation5], %s3072_s4 }
 0x2f4   : > { %p3335_p7 = pnand %p3338_p4, %p3502_p6 }
 0x2f6   : > { %p3336_p8 = pneg %p3335_p7 }
 0x2f8   : > { %3419 = dma.done.wait (%p3336_p8), %s3073_s5, 4096  }
 0x2f9   : > { %3421 = vsyncadd (%p3336_p8), %s3073_s5, 4294963200  ;;  %p13_p9 = scmp.ge.s32.totalorder %s3485_s18, 4   ;;  %s4340_s12 = smov %s3428_s13 }
 0x2fa   : > { %s4341_s13 = smov %s3432_s14  ;;  %s4342_s14 = smov %s3496_s21 }
 0x2fb   : > { %s4343_s15 = smov %s3485_s18  ;;  %15 = sbr.rel (!%p13_p9) target bundleno = 3 (0x3), region = 77 }
 0x300   :  { %3079 = vsyncpa [#allocation5], 1 }
 0x301   :  { %3081 = vsyncpa [#allocation5 + $0x1], 1 }

</bundles_post_ra>
